<compile_context>
chip_gen: v6e
topology: v6e:2x2x1
jax: 0.10.0
libtpu: 0.0.40
codegen_flags: <defaults>
</compile_context>

<pallas_src>
import jax
import jax.numpy as jnp
import numpy as np
from jax.experimental import pallas as pl
from jax.experimental.pallas import tpu as pltpu

BN_EPS = 1e-5
LANE = 128
NEG_INF = -1e30


def _round_up(v, m):
    return (v + m - 1) // m * m


def _pad2(x, rows, cols):
    r, c = x.shape
    return jnp.pad(x, ((0, rows - r), (0, cols - c)))


def _full_spec(shape):
    return pl.BlockSpec(shape, lambda i: (0,) * len(shape))


def _vmem_budget_bytes():
    """Physical VMEM per TensorCore; fall back to v7x's 64 MiB (the smallest)."""
    try:
        return int(pltpu.get_tpu_info().vmem_capacity_bytes)
    except Exception:
        return 64 * 1024 * 1024


def _vmem_limit_bytes():
    return int(min(0.9 * _vmem_budget_bytes(), 96 * 1024 * 1024))


# ------------------------ fused single-block path -------------------------- #

def _make_fused_kernel(num_hidden, compute_dtype):
    """All GCN layers in one kernel.

    hidden layers: H = relu((A @ (H @ W)) * scale + shift)      (f32 epilogue)
    last layer   : out = log_softmax(A @ (H @ W) + b_masked)
    Matmul operands are cast to compute_dtype (bf16 on the fast path) with f32
    MXU accumulation.
    """
    def kernel(*refs):
        a = refs[0][...].astype(compute_dtype)
        h = refs[1][...].astype(compute_dtype)
        idx = 2
        for _ in range(num_hidden):
            w_ref, scale_ref, shift_ref = refs[idx], refs[idx + 1], refs[idx + 2]
            idx += 3
            xw = jnp.dot(h, w_ref[...].astype(compute_dtype),
                         preferred_element_type=jnp.float32)
            z = jnp.dot(a, xw.astype(compute_dtype),
                        preferred_element_type=jnp.float32)
            hf = jnp.maximum(z * scale_ref[...] + shift_ref[...], 0.0)
            h = hf.astype(compute_dtype)
            # TODO(synk): F.dropout is identity here (inference / training=False).
        w_ref, b_ref = refs[idx], refs[idx + 1]
        o_ref = refs[idx + 2]
        xw = jnp.dot(h, w_ref[...].astype(compute_dtype),
                     preferred_element_type=jnp.float32)
        z = jnp.dot(a, xw.astype(compute_dtype),
                    preferred_element_type=jnp.float32)
        z = z + b_ref[...]                       # bias carries -inf on padded lanes
        m = jnp.max(z, axis=-1, keepdims=True)
        s = z - m
        o_ref[...] = s - jnp.log(jnp.sum(jnp.exp(s), axis=-1, keepdims=True))
    return kernel


def gcn_forward_fused(x, a_hat, prepared, *, compute_dtype=jnp.float32):
    """Whole GCN forward in one pallas_call (small graphs: fits VMEM)."""
    n, in_c = x.shape
    n_pad = _round_up(n, LANE)       # lane-dense A layout and A@XW contraction
    in_pad = _round_up(in_c, LANE)
    x_p = _pad2(x.astype(jnp.float32), n_pad, in_pad)
    a_p = _pad2(a_hat.astype(jnp.float32), n_pad, n_pad)

    hidden = prepared["hidden"]
    w_last, b_last = prepared["last"]
    out_c = prepared["out_channels"]
    out_pad = w_last.shape[1]

    args = [a_p, x_p]
    in_specs = [_full_spec(a_p.shape), _full_spec(x_p.shape)]
    for (w, scale, shift) in hidden:
        args += [w, scale, shift]
        in_specs += [_full_spec(w.shape), _full_spec(scale.shape),
                     _full_spec(shift.shape)]
    args += [w_last, b_last]
    in_specs += [_full_spec(w_last.shape), _full_spec(b_last.shape)]

    out = pl.pallas_call(
        _make_fused_kernel(len(hidden), compute_dtype),
        out_shape=jax.ShapeDtypeStruct((n_pad, out_pad), jnp.float32),
        grid_spec=pltpu.PrefetchScalarGridSpec(
            num_scalar_prefetch=0,
            grid=(1,),
            in_specs=in_specs,
            out_specs=pl.BlockSpec((n_pad, out_pad), lambda i: (0, 0))),
        compiler_params=pltpu.CompilerParams(
            dimension_semantics=("arbitrary",),
            vmem_limit_bytes=_vmem_limit_bytes()),
    )(*args)
    return out[:n, :out_c]


# -------------------------- K-tiled large-N path --------------------------- #

def _project_kernel(x_ref, w_ref, o_ref):
    o_ref[...] = jnp.dot(x_ref[...], w_ref[...],
                         preferred_element_type=jnp.float32).astype(o_ref.dtype)


def _agg_hidden_proj_kernel(a_ref, xw_ref, scale_ref, shift_ref, wnext_ref,
                            o_ref, acc_ref):
    """acc += A_blk @ XW_blk; at last K step: h = relu(acc*scale+shift) and the
    NEXT layer's projection h @ W_next is fused into the epilogue."""
    k = pl.program_id(1)

    @pl.when(k == 0)
    def _():
        acc_ref[...] = jnp.zeros_like(acc_ref)

    acc_ref[...] += jnp.dot(a_ref[...], xw_ref[...],
                            preferred_element_type=jnp.float32)

    @pl.when(k == pl.num_programs(1) - 1)
    def _():
        h = jnp.maximum(acc_ref[...] * scale_ref[...] + shift_ref[...], 0.0)
        # TODO(synk): F.dropout is identity here (inference / training=False).
        o_ref[...] = jnp.dot(h.astype(wnext_ref.dtype), wnext_ref[...],
                             preferred_element_type=jnp.float32
                             ).astype(o_ref.dtype)


def _agg_last_kernel(a_ref, xw_ref, b_ref, o_ref, acc_ref):
    k = pl.program_id(1)

    @pl.when(k == 0)
    def _():
        acc_ref[...] = jnp.zeros_like(acc_ref)

    acc_ref[...] += jnp.dot(a_ref[...], xw_ref[...],
                            preferred_element_type=jnp.float32)

    @pl.when(k == pl.num_programs(1) - 1)
    def _():
        z = acc_ref[...] + b_ref[...]            # bias carries -inf on padded lanes
        m = jnp.max(z, axis=-1, keepdims=True)
        s = z - m
        o_ref[...] = s - jnp.log(jnp.sum(jnp.exp(s), axis=-1, keepdims=True))


def gcn_project(x, w, *, tile_m, out_dtype, vmem_limit):
    m, kdim = x.shape
    n = w.shape[1]
    return pl.pallas_call(
        _project_kernel,
        out_shape=jax.ShapeDtypeStruct((m, n), out_dtype),
        grid_spec=pltpu.PrefetchScalarGridSpec(
            num_scalar_prefetch=0,
            grid=(m // tile_m,),
            in_specs=[pl.BlockSpec((tile_m, kdim), lambda i: (i, 0)),
                      pl.BlockSpec((kdim, n), lambda i: (0, 0))],
            out_specs=pl.BlockSpec((tile_m, n), lambda i: (i, 0))),
        compiler_params=pltpu.CompilerParams(
            dimension_semantics=("parallel",),
            vmem_limit_bytes=vmem_limit),
    )(x, w)


def gcn_aggregate_hidden_proj(a, xw, scale, shift, w_next, *, tile_n, tile_k,
                              out_dtype, vmem_limit):
    n = a.shape[0]
    f = xw.shape[1]
    f_next = w_next.shape[1]
    return pl.pallas_call(
        _agg_hidden_proj_kernel,
        out_shape=jax.ShapeDtypeStruct((n, f_next), out_dtype),
        grid_spec=pltpu.PrefetchScalarGridSpec(
            num_scalar_prefetch=0,
            grid=(n // tile_n, n // tile_k),
            in_specs=[pl.BlockSpec((tile_n, tile_k), lambda i, k: (i, k)),
                      pl.BlockSpec((tile_k, f), lambda i, k: (k, 0)),
                      pl.BlockSpec((1, f), lambda i, k: (0, 0)),
                      pl.BlockSpec((1, f), lambda i, k: (0, 0)),
                      pl.BlockSpec((f, f_next), lambda i, k: (0, 0))],
            out_specs=pl.BlockSpec((tile_n, f_next), lambda i, k: (i, 0)),
            scratch_shapes=[pltpu.VMEM((tile_n, f), jnp.float32)]),
        compiler_params=pltpu.CompilerParams(
            dimension_semantics=("parallel", "arbitrary"),
            vmem_limit_bytes=vmem_limit),
    )(a, xw, scale, shift, w_next)


def gcn_aggregate_last(a, xw, b, *, tile_n, tile_k, vmem_limit):
    n = a.shape[0]
    f = xw.shape[1]
    return pl.pallas_call(
        _agg_last_kernel,
        out_shape=jax.ShapeDtypeStruct((n, f), jnp.float32),
        grid_spec=pltpu.PrefetchScalarGridSpec(
            num_scalar_prefetch=0,
            grid=(n // tile_n, n // tile_k),
            in_specs=[pl.BlockSpec((tile_n, tile_k), lambda i, k: (i, k)),
                      pl.BlockSpec((tile_k, f), lambda i, k: (k, 0)),
                      pl.BlockSpec((1, f), lambda i, k: (0, 0))],
            out_specs=pl.BlockSpec((tile_n, f), lambda i, k: (i, 0)),
            scratch_shapes=[pltpu.VMEM((tile_n, f), jnp.float32)]),
        compiler_params=pltpu.CompilerParams(
            dimension_semantics=("parallel", "arbitrary"),
            vmem_limit_bytes=vmem_limit),
    )(a, xw, b)


def gcn_forward_tiled(x, a_hat, prepared, *, tile_n=256, tile_k=256,
                      compute_dtype=jnp.float32):
    """K-tiled path for larger graphs.  Per grid step the working set is
    (tile_n x tile_k) of A + (tile_k x F) of XW + a (tile_n x F) f32 scratch,
    independent of N.  Row axis is 'parallel' (megacore), K axis 'arbitrary'.
    compute_dtype=bf16 halves A/XW HBM traffic with f32 MXU accumulation."""
    n, in_c = x.shape
    n_pad = _round_up(n, max(tile_n, tile_k))
    # v7x megacore: keep the row-tile step count even when possible so both
    # TensorCores stay busy.
    steps = n_pad // tile_n
    if steps % 2 == 1 and steps > 1 and tile_n % 16 == 0:
        tile_n //= 2
    in_pad = _round_up(in_c, LANE)
    vlim = _vmem_limit_bytes()

    a = _pad2(a_hat.astype(jnp.float32), n_pad, n_pad).astype(compute_dtype)
    h = _pad2(x.astype(jnp.float32), n_pad, in_pad).astype(compute_dtype)

    hidden = prepared["hidden"]
    w_last, b_last = prepared["last"]

    # Layer-0 projection; output written directly in compute_dtype.
    w0 = hidden[0][0] if hidden else w_last
    xw = gcn_project(h, w0.astype(compute_dtype), tile_m=tile_n,
                     out_dtype=compute_dtype, vmem_limit=vlim)

    # Each hidden layer: aggregation + fused NEXT-layer projection.
    for li, (_, scale, shift) in enumerate(hidden):
        w_next = hidden[li + 1][0] if li + 1 < len(hidden) else w_last
        xw = gcn_aggregate_hidden_proj(
            a, xw, scale, shift, w_next.astype(compute_dtype),
            tile_n=tile_n, tile_k=tile_k, out_dtype=compute_dtype,
            vmem_limit=vlim)

    out = gcn_aggregate_last(a, xw, b_last, tile_n=tile_n, tile_k=tile_k,
                             vmem_limit=vlim)
    return out[:n, :prepared["out_channels"]]


# ------------------------ fused/tiled crossover ----------------------------- #

def _fused_vmem_estimate(n, in_c, prepared):
    n_pad = _round_up(max(n, 1), LANE)
    in_pad = _round_up(in_c, LANE)
    w_last, b_last = prepared["last"]
    out_pad = w_last.shape[1]
    feat_pads = [in_pad, out_pad] + [w.shape[1] for (w, _, _) in prepared["hidden"]]
    est = n_pad * n_pad * 4 + n_pad * in_pad * 4          # A_hat + X
    for (w, scale, shift) in prepared["hidden"]:
        est += 4 * (w.size + scale.size + shift.size)
    est += 4 * (w_last.size + b_last.size)
    est += n_pad * out_pad * 4                             # output
    est += 3 * n_pad * max(feat_pads) * 4                  # live intermediates
    return est


def gcn_forward(x, a_hat, prepared, *, compute_dtype=jnp.float32,
                tile_n=256, tile_k=256):
    """Pick the fused single-block path vs. the K-tiled path based on the
    chip's actual VMEM capacity (v7x has half of v6e's)."""
    if _fused_vmem_estimate(x.shape[0], x.shape[1], prepared) \
            <= 0.5 * _vmem_budget_bytes():
        return gcn_forward_fused(x, a_hat, prepared, compute_dtype=compute_dtype)
    return gcn_forward_tiled(x, a_hat, prepared, tile_n=tile_n, tile_k=tile_k,
                             compute_dtype=compute_dtype)


# -------------------------- parameter preparation -------------------------- #

def prepare_params(params):
    """Fold bias+BatchNorm into scale/shift, pad all feature dims to 128 lanes,
    and fold the -inf padded-lane mask into the last-layer bias."""
    convs, bns = params["convs"], params["bns"]
    hidden = []
    for i in range(len(convs) - 1):
        w, b = convs[i]
        gamma, beta, mean, var = bns[i]
        f_in, f_out = w.shape
        f_in_p, f_out_p = _round_up(f_in, LANE), _round_up(f_out, LANE)
        scale = gamma * jax.lax.rsqrt(var + BN_EPS)
        shift = beta + (b - mean) * scale
        hidden.append((_pad2(w, f_in_p, f_out_p),
                       _pad2(scale, 1, f_out_p),
                       _pad2(shift, 1, f_out_p)))
    w, b = convs[-1]
    f_in, f_out = w.shape
    f_in_p, f_out_p = _round_up(f_in, LANE), _round_up(f_out, LANE)
    # Padded W/b lanes are exactly zero, so z on padded lanes is exactly
    # NEG_INF after the fold and exp() underflows to 0 in the f32 epilogue.
    mask = jnp.where(jnp.arange(f_out_p) < f_out, 0.0, NEG_INF)
    b_masked = _pad2(b, 1, f_out_p) + mask.astype(jnp.float32).reshape(1, f_out_p)
    return {"hidden": hidden,
            "last": (_pad2(w, f_in_p, f_out_p), b_masked),
            "out_channels": f_out}


# ----------------------- reference (plain JAX) ------------------------------ #

def gcn_forward_ref(x, a_hat, params):
    convs, bns = params["convs"], params["bns"]
    for i in range(len(convs) - 1):
        w, b = convs[i]
        gamma, beta, mean, var = bns[i]
        h = a_hat @ (x @ w) + b
        h = (h - mean) / jnp.sqrt(var + BN_EPS) * gamma + beta
        x = jnp.maximum(h, 0.0)
    w, b = convs[-1]
    h = a_hat @ (x @ w) + b
    return jax.nn.log_softmax(h, axis=-1)


# ------------------------------ setup -------------------------------------- #

def glorot(key, shape):
    lim = float(np.sqrt(6.0 / (shape[0] + shape[1])))
    return jax.random.uniform(key, shape, jnp.float32, -lim, lim)


def init_params(key, in_channels, hidden_channels, out_channels, num_layers):
    dims = ([in_channels] + [hidden_channels] * (num_layers - 1)
            + [out_channels])
    convs, bns = [], []
    for li in range(num_layers):
        key, kw = jax.random.split(key)
        w = glorot(kw, (dims[li], dims[li + 1]))
        b = jnp.zeros((1, dims[li + 1]), jnp.float32)
        convs.append((w, b))
        if li < num_layers - 1:
            key, k1, k2, k3, k4 = jax.random.split(key, 5)
            f = dims[li + 1]
            gamma = 1.0 + 0.1 * jax.random.normal(k1, (1, f), jnp.float32)
            beta = 0.1 * jax.random.normal(k2, (1, f), jnp.float32)
            mean = 0.1 * jax.random.normal(k3, (1, f), jnp.float32)
            var = 1.0 + 0.1 * jax.random.uniform(k4, (1, f), jnp.float32)
            bns.append((gamma, beta, mean, var))
    return {"convs": convs, "bns": bns}


def build_normalized_adj(key, n, edge_prob=0.1):
    # Random symmetric 0/1 adjacency, then GCN normalization with self-loops.
    u = jax.random.uniform(key, (n, n))
    a = (u < edge_prob).astype(jnp.float32)
    a = jnp.maximum(a, a.T)
    a = a * (1.0 - jnp.eye(n))
    a = a + jnp.eye(n)
    deg = jnp.sum(a, axis=1)
    d_inv_sqrt = jax.lax.rsqrt(deg)
    return a * d_inv_sqrt[:, None] * d_inv_sqrt[None, :]


if __name__ == "__main__":
    IN_C, HID_C, OUT_C = 16, 32, 8
    NUM_LAYERS = 3
    # dropout p=0.5 declared in the module; identity at inference.

    key = jax.random.PRNGKey(0)
    kx, ka, kp, kx2, ka2 = jax.random.split(key, 5)
    params = init_params(kp, IN_C, HID_C, OUT_C, NUM_LAYERS)
    prepared = prepare_params(params)

    # --- small graph: fused single-block kernel (f32 + bf16 MXU paths) ---
    N = 64
    x = jax.random.normal(kx, (N, IN_C), jnp.float32)
    a_hat = build_normalized_adj(ka, N)
    ref = gcn_forward_ref(x, a_hat, params)

    out = jax.block_until_ready(gcn_forward(x, a_hat, prepared))
    np.testing.assert_allclose(np.asarray(out), np.asarray(ref),
                               rtol=1e-4, atol=1e-4)

    out_bf16 = jax.block_until_ready(
        gcn_forward_fused(x, a_hat, prepared, compute_dtype=jnp.bfloat16))
    np.testing.assert_allclose(np.asarray(out_bf16), np.asarray(ref),
                               rtol=5e-2, atol=5e-2)

    # --- larger graph: K-tiled, fully parallel row grid (even step count) ---
    N2 = 512
    x2 = jax.random.normal(kx2, (N2, IN_C), jnp.float32)
    a_hat2 = build_normalized_adj(ka2, N2)
    ref2 = gcn_forward_ref(x2, a_hat2, params)

    out2 = jax.block_until_ready(
        gcn_forward_tiled(x2, a_hat2, prepared, tile_n=256, tile_k=256))
    np.testing.assert_allclose(np.asarray(out2), np.asarray(ref2),
                               rtol=1e-3, atol=1e-3)

    out2_bf16 = jax.block_until_ready(
        gcn_forward_tiled(x2, a_hat2, prepared, tile_n=256, tile_k=256,
                          compute_dtype=jnp.bfloat16))
    np.testing.assert_allclose(np.asarray(out2_bf16), np.asarray(ref2),
                               rtol=5e-2, atol=5e-2)

    print("KERNEL_OK")
</pallas_src>

<mosaic_0001>
module attributes {stable_mosaic.version = 11 : i64} {
  func.func @kernel(%arg0: i32, %arg1: memref<128x128xf32, #tpu.memory_space<vmem>>, %arg2: memref<128x128xf32, #tpu.memory_space<vmem>>, %arg3: memref<128x128xf32, #tpu.memory_space<vmem>>, %arg4: memref<1x128xf32, #tpu.memory_space<vmem>>, %arg5: memref<1x128xf32, #tpu.memory_space<vmem>>, %arg6: memref<128x128xf32, #tpu.memory_space<vmem>>, %arg7: memref<1x128xf32, #tpu.memory_space<vmem>>, %arg8: memref<1x128xf32, #tpu.memory_space<vmem>>, %arg9: memref<128x128xf32, #tpu.memory_space<vmem>>, %arg10: memref<1x128xf32, #tpu.memory_space<vmem>>, %arg11: memref<128x128xf32, #tpu.memory_space<vmem>>) attributes {dimension_semantics = [#tpu.dimension_semantics<arbitrary>], iteration_bounds = array<i64: 1>, scalar_prefetch = 0 : i64, scratch_operands = 0 : i64, tpu.core_type = #tpu.core_type<tc>, window_params = [{pipeline_mode = #tpu.pipeline_mode<synchronous>, transform_indices = @transform_0, window_bounds = array<i64: 128, 128>}, {pipeline_mode = #tpu.pipeline_mode<synchronous>, transform_indices = @transform_1, window_bounds = array<i64: 128, 128>}, {pipeline_mode = #tpu.pipeline_mode<synchronous>, transform_indices = @transform_2, window_bounds = array<i64: 128, 128>}, {pipeline_mode = #tpu.pipeline_mode<synchronous>, transform_indices = @transform_3, window_bounds = array<i64: 1, 128>}, {pipeline_mode = #tpu.pipeline_mode<synchronous>, transform_indices = @transform_4, window_bounds = array<i64: 1, 128>}, {pipeline_mode = #tpu.pipeline_mode<synchronous>, transform_indices = @transform_5, window_bounds = array<i64: 128, 128>}, {pipeline_mode = #tpu.pipeline_mode<synchronous>, transform_indices = @transform_6, window_bounds = array<i64: 1, 128>}, {pipeline_mode = #tpu.pipeline_mode<synchronous>, transform_indices = @transform_7, window_bounds = array<i64: 1, 128>}, {pipeline_mode = #tpu.pipeline_mode<synchronous>, transform_indices = @transform_8, window_bounds = array<i64: 128, 128>}, {pipeline_mode = #tpu.pipeline_mode<synchronous>, transform_indices = @transform_9, window_bounds = array<i64: 1, 128>}, {pipeline_mode = #tpu.pipeline_mode<synchronous>, transform_indices = @transform_10, window_bounds = array<i64: 128, 128>}]} {
    %c0 = arith.constant 0 : index
    %c0_0 = arith.constant 0 : index
    %0 = vector.load %arg1[%c0, %c0_0] : memref<128x128xf32, #tpu.memory_space<vmem>>, vector<128x128xf32>
    %c0_1 = arith.constant 0 : index
    %c0_2 = arith.constant 0 : index
    %1 = vector.load %arg2[%c0_1, %c0_2] : memref<128x128xf32, #tpu.memory_space<vmem>>, vector<128x128xf32>
    %c0_3 = arith.constant 0 : index
    %c0_4 = arith.constant 0 : index
    %2 = vector.load %arg3[%c0_3, %c0_4] : memref<128x128xf32, #tpu.memory_space<vmem>>, vector<128x128xf32>
    %cst = arith.constant dense<0.000000e+00> : vector<128x128xf32>
    %3 = tpu.matmul %1, %2, %cst {dimension_numbers = #tpu.dot_dimension_numbers<[1], [0], [0], [1], [0, 0, 1, 1], [], []>} : vector<128x128xf32>, vector<128x128xf32>, vector<128x128xf32> -> vector<128x128xf32>
    %cst_5 = arith.constant dense<0.000000e+00> : vector<128x128xf32>
    %4 = tpu.matmul %0, %3, %cst_5 {dimension_numbers = #tpu.dot_dimension_numbers<[1], [0], [0], [1], [0, 0, 1, 1], [], []>} : vector<128x128xf32>, vector<128x128xf32>, vector<128x128xf32> -> vector<128x128xf32>
    %c0_6 = arith.constant 0 : index
    %c0_7 = arith.constant 0 : index
    %5 = vector.load %arg4[%c0_6, %c0_7] : memref<1x128xf32, #tpu.memory_space<vmem>>, vector<1x128xf32>
    %6 = vector.broadcast %5 : vector<1x128xf32> to vector<128x128xf32>
    %7 = arith.mulf %4, %6 : vector<128x128xf32>
    %c0_8 = arith.constant 0 : index
    %c0_9 = arith.constant 0 : index
    %8 = vector.load %arg5[%c0_8, %c0_9] : memref<1x128xf32, #tpu.memory_space<vmem>>, vector<1x128xf32>
    %9 = vector.broadcast %8 : vector<1x128xf32> to vector<128x128xf32>
    %10 = arith.addf %7, %9 : vector<128x128xf32>
    %cst_10 = arith.constant 0.000000e+00 : f32
    %11 = vector.broadcast %cst_10 : f32 to vector<128x128xf32>
    %12 = arith.maximumf %10, %11 : vector<128x128xf32>
    %c0_11 = arith.constant 0 : index
    %c0_12 = arith.constant 0 : index
    %13 = vector.load %arg6[%c0_11, %c0_12] : memref<128x128xf32, #tpu.memory_space<vmem>>, vector<128x128xf32>
    %cst_13 = arith.constant dense<0.000000e+00> : vector<128x128xf32>
    %14 = tpu.matmul %12, %13, %cst_13 {dimension_numbers = #tpu.dot_dimension_numbers<[1], [0], [0], [1], [0, 0, 1, 1], [], []>} : vector<128x128xf32>, vector<128x128xf32>, vector<128x128xf32> -> vector<128x128xf32>
    %cst_14 = arith.constant dense<0.000000e+00> : vector<128x128xf32>
    %15 = tpu.matmul %0, %14, %cst_14 {dimension_numbers = #tpu.dot_dimension_numbers<[1], [0], [0], [1], [0, 0, 1, 1], [], []>} : vector<128x128xf32>, vector<128x128xf32>, vector<128x128xf32> -> vector<128x128xf32>
    %c0_15 = arith.constant 0 : index
    %c0_16 = arith.constant 0 : index
    %16 = vector.load %arg7[%c0_15, %c0_16] : memref<1x128xf32, #tpu.memory_space<vmem>>, vector<1x128xf32>
    %17 = vector.broadcast %16 : vector<1x128xf32> to vector<128x128xf32>
    %18 = arith.mulf %15, %17 : vector<128x128xf32>
    %c0_17 = arith.constant 0 : index
    %c0_18 = arith.constant 0 : index
    %19 = vector.load %arg8[%c0_17, %c0_18] : memref<1x128xf32, #tpu.memory_space<vmem>>, vector<1x128xf32>
    %20 = vector.broadcast %19 : vector<1x128xf32> to vector<128x128xf32>
    %21 = arith.addf %18, %20 : vector<128x128xf32>
    %cst_19 = arith.constant 0.000000e+00 : f32
    %22 = vector.broadcast %cst_19 : f32 to vector<128x128xf32>
    %23 = arith.maximumf %21, %22 : vector<128x128xf32>
    %c0_20 = arith.constant 0 : index
    %c0_21 = arith.constant 0 : index
    %24 = vector.load %arg9[%c0_20, %c0_21] : memref<128x128xf32, #tpu.memory_space<vmem>>, vector<128x128xf32>
    %cst_22 = arith.constant dense<0.000000e+00> : vector<128x128xf32>
    %25 = tpu.matmul %23, %24, %cst_22 {dimension_numbers = #tpu.dot_dimension_numbers<[1], [0], [0], [1], [0, 0, 1, 1], [], []>} : vector<128x128xf32>, vector<128x128xf32>, vector<128x128xf32> -> vector<128x128xf32>
    %cst_23 = arith.constant dense<0.000000e+00> : vector<128x128xf32>
    %26 = tpu.matmul %0, %25, %cst_23 {dimension_numbers = #tpu.dot_dimension_numbers<[1], [0], [0], [1], [0, 0, 1, 1], [], []>} : vector<128x128xf32>, vector<128x128xf32>, vector<128x128xf32> -> vector<128x128xf32>
    %c0_24 = arith.constant 0 : index
    %c0_25 = arith.constant 0 : index
    %27 = vector.load %arg10[%c0_24, %c0_25] : memref<1x128xf32, #tpu.memory_space<vmem>>, vector<1x128xf32>
    %28 = vector.broadcast %27 : vector<1x128xf32> to vector<128x128xf32>
    %29 = arith.addf %26, %28 : vector<128x128xf32>
    %cst_26 = arith.constant dense<0xFF800000> : vector<128xf32>
    %30 = vector.multi_reduction <maximumf>, %29, %cst_26 [1] : vector<128x128xf32> to vector<128xf32>
    %31 = vector.shape_cast %30 : vector<128xf32> to vector<128x1xf32>
    %32 = vector.broadcast %31 : vector<128x1xf32> to vector<128x128xf32>
    %33 = arith.subf %29, %32 : vector<128x128xf32>
    %34 = math.exp %33 : vector<128x128xf32>
    %cst_27 = arith.constant dense<0.000000e+00> : vector<128xf32>
    %35 = vector.multi_reduction <add>, %34, %cst_27 [1] : vector<128x128xf32> to vector<128xf32>
    %36 = vector.shape_cast %35 : vector<128xf32> to vector<128x1xf32>
    %37 = math.log %36 : vector<128x1xf32>
    %38 = vector.broadcast %37 : vector<128x1xf32> to vector<128x128xf32>
    %39 = arith.subf %33, %38 : vector<128x128xf32>
    %c0_28 = arith.constant 0 : index
    %c0_29 = arith.constant 0 : index
    %40 = vector.load %arg11[%c0_28, %c0_29] : memref<128x128xf32, #tpu.memory_space<vmem>>, vector<128x128xf32>
    tpu.vector_store %arg11[%c0_28, %c0_29], %39 {strides = array<i32>} : memref<128x128xf32, #tpu.memory_space<vmem>>, vector<128x128xf32>,
    return
  }
  func.func @transform_0(%arg0: i32) -> (i32, i32) {
    %c0_i32 = arith.constant 0 : i32
    %c0_i32_0 = arith.constant 0 : i32
    %c0_i32_1 = arith.constant 0 : i32
    return %c0_i32, %c0_i32_0 : i32, i32
  }
  func.func @transform_1(%arg0: i32) -> (i32, i32) {
    %c0_i32 = arith.constant 0 : i32
    %c0_i32_0 = arith.constant 0 : i32
    %c0_i32_1 = arith.constant 0 : i32
    return %c0_i32, %c0_i32_0 : i32, i32
  }
  func.func @transform_2(%arg0: i32) -> (i32, i32) {
    %c0_i32 = arith.constant 0 : i32
    %c0_i32_0 = arith.constant 0 : i32
    %c0_i32_1 = arith.constant 0 : i32
    return %c0_i32, %c0_i32_0 : i32, i32
  }
  func.func @transform_3(%arg0: i32) -> (i32, i32) {
    %c0_i32 = arith.constant 0 : i32
    %c0_i32_0 = arith.constant 0 : i32
    %c0_i32_1 = arith.constant 0 : i32
    return %c0_i32, %c0_i32_0 : i32, i32
  }
  func.func @transform_4(%arg0: i32) -> (i32, i32) {
    %c0_i32 = arith.constant 0 : i32
    %c0_i32_0 = arith.constant 0 : i32
    %c0_i32_1 = arith.constant 0 : i32
    return %c0_i32, %c0_i32_0 : i32, i32
  }
  func.func @transform_5(%arg0: i32) -> (i32, i32) {
    %c0_i32 = arith.constant 0 : i32
    %c0_i32_0 = arith.constant 0 : i32
    %c0_i32_1 = arith.constant 0 : i32
    return %c0_i32, %c0_i32_0 : i32, i32
  }
  func.func @transform_6(%arg0: i32) -> (i32, i32) {
    %c0_i32 = arith.constant 0 : i32
    %c0_i32_0 = arith.constant 0 : i32
    %c0_i32_1 = arith.constant 0 : i32
    return %c0_i32, %c0_i32_0 : i32, i32
  }
  func.func @transform_7(%arg0: i32) -> (i32, i32) {
    %c0_i32 = arith.constant 0 : i32
    %c0_i32_0 = arith.constant 0 : i32
    %c0_i32_1 = arith.constant 0 : i32
    return %c0_i32, %c0_i32_0 : i32, i32
  }
  func.func @transform_8(%arg0: i32) -> (i32, i32) {
    %c0_i32 = arith.constant 0 : i32
    %c0_i32_0 = arith.constant 0 : i32
    %c0_i32_1 = arith.constant 0 : i32
    return %c0_i32, %c0_i32_0 : i32, i32
  }
  func.func @transform_9(%arg0: i32) -> (i32, i32) {
    %c0_i32 = arith.constant 0 : i32
    %c0_i32_0 = arith.constant 0 : i32
    %c0_i32_1 = arith.constant 0 : i32
    return %c0_i32, %c0_i32_0 : i32, i32
  }
  func.func @transform_10(%arg0: i32) -> (i32, i32) {
    %c0_i32 = arith.constant 0 : i32
    %c0_i32_0 = arith.constant 0 : i32
    %c0_i32_1 = arith.constant 0 : i32
    return %c0_i32, %c0_i32_0 : i32, i32
  }
}

</mosaic_0001>

<bundles_post_ra>
// kernel: tpu_custom_call.1
= control target key start
LH: loop header
LB: loop body
LE: loop exit
PB: predicated region body
PF: predicated region fallthrough
CT: control target
= control target key end

     0   :  { %15 = vsyncpa [#allocation3], 0  ;;  %s2459_s0 = inlined_call_operand.hbm [shape: f32[128,128], index: 0, kind: input, shape index: {}]   ;;  %s2460_s1 = inlined_call_operand.hbm [shape: f32[128,128], index: 1, kind: input, shape index: {}]   ;;  %s2461_s2 = inlined_call_operand.hbm [shape: f32[128,128], index: 2, kind: input, shape index: {}]   ;;  %s2462_s3 = inlined_call_operand.vmem [shape: f32[1,128], index: 3, kind: input, shape index: {}]   ;;  %s2463_s4 = inlined_call_operand.vmem [shape: f32[1,128], index: 4, kind: input, shape index: {}]   ;;  %s2464_s5 = inlined_call_operand.hbm [shape: f32[128,128], index: 5, kind: input, shape index: {}]   ;;  %s2465_s6 = inlined_call_operand.vmem [shape: f32[1,128], index: 6, kind: input, shape index: {}]   ;;  %s2466_s7 = inlined_call_operand.vmem [shape: f32[1,128], index: 7, kind: input, shape index: {}]   ;;  %s2467_s8 = inlined_call_operand.hbm [shape: f32[128,128], index: 8, kind: input, shape index: {}]   ;;  %s2468_s9 = inlined_call_operand.vmem [shape: f32[1,128], index: 9, kind: input, shape index: {}]   ;;  %s2469_s10 = inlined_call_operand.hbm [shape: f32[128,128], index: 10, kind: output, shape index: {}]  }
   0x1   :  { %16 = vsyncpa [#allocation6], 0 }
   0x2   :  { %17 = vsyncpa [#allocation9], 0 }
   0x3   :  { %18 = vsyncpa [#allocation4], 0  ;;  %s2113_s13 = smov [#allocation5]   ;;  %s2114_s15 = smov [#allocation8]  }
   0x4   :  { %s36_s14 = sshll.u32 %s2113_s13, 4  ;;  %s64_s16 = sshll.u32 %s2114_s15, 4  ;;  %s37_s14 = int_to_ptr.vmem [resolvable:$true] %s36_s14  ;;  %s65_s16 = int_to_ptr.vmem [resolvable:$true] %s64_s16 }
   0x5   :  { %s1993_s17 = scalar_lea.vmem %s37_s14, 2048  ;;  %p1998_p1 = scmp.lt.s32.totalorder %s37_s14, %s37_s14 }
   0x6   :  { %p1994_p0 = scmp.ne.s32.totalorder %s37_s14, %s1993_s17  ;;  %p1999_p2 = scmp.lt.s32.totalorder %s1993_s17, %s1993_s17 }
   0x8   :  { %p2000_p3 = por %p1999_p2, %p1998_p1 }
   0xa   :  { %p2001_p4 = pnand %p2000_p3, %p1994_p0 }
   0xc   :  { %2004 = shalt.err (!%p2001_p4)
}
   0xd   :  { %s2115_s18 = smov 128   ;;  %s2116_s19 = smov 8  }
   0xe   :  { %42 = dma.hbm_to_vmem [thread:$0]  %s2460_s1, 2048, %s37_s14, [#allocation6], %s2115_s18, %s2115_s18, %s2116_s19  }
   0xf   :  { %s2013_s22 = scalar_lea.vmem %s65_s16, 2048  ;;  %p2018_p6 = scmp.lt.s32.totalorder %s65_s16, %s65_s16 }
  0x10   :  { %p2014_p5 = scmp.ne.s32.totalorder %s65_s16, %s2013_s22  ;;  %p2019_p7 = scmp.lt.s32.totalorder %s2013_s22, %s2013_s22 }
  0x12   :  { %p2020_p8 = por %p2019_p7, %p2018_p6 }
  0x14   :  { %p2021_p9 = pnand %p2020_p8, %p2014_p5 }
  0x16   :  { %2024 = shalt.err (!%p2021_p9)
}
  0x17   :  { %70 = dma.hbm_to_vmem [thread:$0]  %s2464_s5, 2048, %s65_s16, [#allocation9], %s2115_s18, %s2115_s18, %s2116_s19  }
  0x18   :  { %s2117_s25 = smov [#allocation2]   ;;  %s2118_s27 = smov [#allocation7]  }
  0x19   :  { %s24_s26 = sshll.u32 %s2117_s25, 4  ;;  %s48_s28 = sshll.u32 %s2118_s27, 4  ;;  %s25_s26 = int_to_ptr.vmem [resolvable:$true] %s24_s26  ;;  %s49_s28 = int_to_ptr.vmem [resolvable:$true] %s48_s28 }
  0x1a   :  { %s2033_s1 = scalar_lea.vmem %s25_s26, 2048  ;;  %p2038_p11 = scmp.lt.s32.totalorder %s25_s26, %s25_s26 }
  0x1b   :  { %p2034_p10 = scmp.ne.s32.totalorder %s25_s26, %s2033_s1  ;;  %p2039_p12 = scmp.lt.s32.totalorder %s2033_s1, %s2033_s1 }
  0x1d   :  { %p2040_p13 = por %p2039_p12, %p2038_p11 }
  0x1f   :  { %p2041_p0 = pnand %p2040_p13, %p2034_p10 }
  0x21   :  { %2044 = shalt.err (!%p2041_p0)
}
  0x22   :  { %30 = dma.hbm_to_vmem [thread:$0]  %s2459_s0, 2048, %s25_s26, [#allocation3], %s2115_s18, %s2115_s18, %s2116_s19  }
  0x23   :  { %s2053_s5 = scalar_lea.vmem %s49_s28, 2048  ;;  %p2058_p2 = scmp.lt.s32.totalorder %s49_s28, %s49_s28 }
  0x24   :  { %p2054_p1 = scmp.ne.s32.totalorder %s49_s28, %s2053_s5  ;;  %p2059_p3 = scmp.lt.s32.totalorder %s2053_s5, %s2053_s5 }
  0x26   :  { %p2060_p4 = por %p2059_p3, %p2058_p2 }
  0x28   :  { %p2061_p5 = pnand %p2060_p4, %p2054_p1 }
  0x2a   :  { %2064 = shalt.err (!%p2061_p5)
}
  0x2b   :  { %54 = dma.hbm_to_vmem [thread:$0]  %s2461_s2, 2048, %s49_s28, [#allocation6], %s2115_s18, %s2115_s18, %s2116_s19  }
  0x2c   :  { %s2119_s13 = smov [#allocation10]  }
  0x2d   :  { %s80_s14 = sshll.u32 %s2119_s13, 4  ;;  %s81_s14 = int_to_ptr.vmem [resolvable:$true] %s80_s14 }
  0x2e   :  { %s2073_s15 = scalar_lea.vmem %s81_s14, 2048  ;;  %p2078_p7 = scmp.lt.s32.totalorder %s81_s14, %s81_s14 }
  0x2f   :  { %p2074_p6 = scmp.ne.s32.totalorder %s81_s14, %s2073_s15  ;;  %p2079_p8 = scmp.lt.s32.totalorder %s2073_s15, %s2073_s15 }
  0x31   :  { %p2080_p9 = por %p2079_p8, %p2078_p7 }
  0x33   :  { %p2081_p10 = pnand %p2080_p9, %p2074_p6 }
  0x35   :  { %2084 = shalt.err (!%p2081_p10)
}
  0x36   :  { %86 = dma.hbm_to_vmem [thread:$0]  %s2467_s8, 2048, %s81_s14, [#allocation9], %s2115_s18, %s2115_s18, %s2116_s19  }
  0x37   :  { %2105 = dma.done.wait [#allocation3], 2048  }
  0x38   :  { %2106 = vsyncadd [#allocation3], 4294965248 }
  0x39   :  { %2107 = dma.done.wait [#allocation6], 4096  }
  0x3a   :  { %2108 = vsyncadd [#allocation6], 4294963200 }
  0x3b   :  { %2109 = dma.done.wait [#allocation9], 4096  }
  0x3c   :  { %2110 = vsyncadd [#allocation9], 4294963200  ;;  %v151_v0 = vld [vmem:[#allocation7 + $0x78] sm:$0xff]  ;;  %v150_v1 = vld [vmem:[#allocation7 + $0x70] sm:$0xff] }
  0x3d   :  { %1577 = vmatprep.subr.mxu0 %v151_v0  ;;  %v149_v2 = vld [vmem:[#allocation7 + $0x68] sm:$0xff]  ;;  %v148_v3 = vld [vmem:[#allocation7 + $0x60] sm:$0xff]  ;;  %v147_v5 = vld [vmem:[#allocation7 + $0x58] sm:$0xff] }
  0x3e   :  { %1578 = vmatpush3.msra.mxu0 %v151_v0  ;;  %v120_v4 = vld [vmem:[#allocation5] sm:$0xff]  ;;  %v146_v6 = vld [vmem:[#allocation7 + $0x50] sm:$0xff]  ;;  %v145_v7 = vld [vmem:[#allocation7 + $0x48] sm:$0xff] }
  0x3f   :  { %1579 = vmatprep.subr.mxu0 %v150_v1  ;;  %1609 = vmatprep.mubr.f32.mxu0 %v120_v4  ;;  %v144_v8 = vld [vmem:[#allocation7 + $0x40] sm:$0xff]  ;;  %v143_v9 = vld [vmem:[#allocation7 + $0x38] sm:$0xff]  ;;  %v142_v10 = vld [vmem:[#allocation7 + $0x30] sm:$0xff] }
  0x40   :  { %1580 = vmatpush3.msra.mxu0 %v150_v1  ;;  %v141_v11 = vld [vmem:[#allocation7 + $0x28] sm:$0xff]  ;;  %v140_v12 = vld [vmem:[#allocation7 + $0x20] sm:$0xff]  ;;  %v139_v13 = vld [vmem:[#allocation7 + $0x18] sm:$0xff] }
  0x41   :  { %1581 = vmatprep.subr.mxu0 %v149_v2  ;;  %v138_v14 = vld [vmem:[#allocation7 + $0x10] sm:$0xff]  ;;  %v137_v15 = vld [vmem:[#allocation7 + $0x8] sm:$0xff]  ;;  %v136_v16 = vld [vmem:[#allocation7] sm:$0xff] }
  0x42   :  { %1582 = vmatpush3.msra.mxu0 %v149_v2  ;;  %v121_v17 = vld [vmem:[#allocation5 + $0x8] sm:$0xff]  ;;  %v122_v18 = vld [vmem:[#allocation5 + $0x10] sm:$0xff]  ;;  %v123_v19 = vld [vmem:[#allocation5 + $0x18] sm:$0xff] }
  0x43   :  { %1583 = vmatprep.subr.mxu0 %v148_v3  ;;  %v124_v20 = vld [vmem:[#allocation5 + $0x20] sm:$0xff]  ;;  %v125_v21 = vld [vmem:[#allocation5 + $0x28] sm:$0xff]  ;;  %v126_v22 = vld [vmem:[#allocation5 + $0x30] sm:$0xff] }
  0x44   :  { %1584 = vmatpush3.msra.mxu0 %v148_v3  ;;  %v127_v23 = vld [vmem:[#allocation5 + $0x38] sm:$0xff]  ;;  %v128_v24 = vld [vmem:[#allocation5 + $0x40] sm:$0xff]  ;;  %v129_v25 = vld [vmem:[#allocation5 + $0x48] sm:$0xff] }
  0x45   :  { %1585 = vmatprep.subr.mxu0 %v147_v5  ;;  %v130_v26 = vld [vmem:[#allocation5 + $0x50] sm:$0xff]  ;;  %v131_v27 = vld [vmem:[#allocation5 + $0x58] sm:$0xff]  ;;  %v132_v28 = vld [vmem:[#allocation5 + $0x60] sm:$0xff] }
  0x46   :  { %1586 = vmatpush3.msra.mxu0 %v147_v5  ;;  %v133_v29 = vld [vmem:[#allocation5 + $0x68] sm:$0xff]  ;;  %v134_v30 = vld [vmem:[#allocation5 + $0x70] sm:$0xff]  ;;  %v135_v31 = vld [vmem:[#allocation5 + $0x78] sm:$0xff] }
  0x47   :  { %1587 = vmatprep.subr.mxu0 %v146_v6  ;;  %v2206_v32 = vld [vmem:[#allocation2] sm:$0xff]  ;;  %v519_v33 = vld [vmem:[#allocation8 + $0x78] sm:$0xff]  ;;  %v518_v34 = vld [vmem:[#allocation8 + $0x70] sm:$0xff] }
  0x48   :  { %1588 = vmatpush3.msra.mxu0 %v146_v6  ;;  %1665 = vmatprep.mubr.f32.mxu1 %v2206_v32  ;;  %v517_v35 = vld [vmem:[#allocation8 + $0x68] sm:$0xff]  ;;  %v516_v36 = vld [vmem:[#allocation8 + $0x60] sm:$0xff]  ;;  %v515_v37 = vld [vmem:[#allocation8 + $0x58] sm:$0xff] }
  0x49   :  { %1589 = vmatprep.subr.mxu0 %v145_v7  ;;  %v514_v38 = vld [vmem:[#allocation8 + $0x50] sm:$0xff]  ;;  %v513_v39 = vld [vmem:[#allocation8 + $0x48] sm:$0xff]  ;;  %v512_v40 = vld [vmem:[#allocation8 + $0x40] sm:$0xff] }
  0x4a   :  { %1590 = vmatpush3.msra.mxu0 %v145_v7  ;;  %v511_v41 = vld [vmem:[#allocation8 + $0x38] sm:$0xff]  ;;  %v510_v42 = vld [vmem:[#allocation8 + $0x30] sm:$0xff]  ;;  %v509_v43 = vld [vmem:[#allocation8 + $0x28] sm:$0xff] }
  0x4b   :  { %1591 = vmatprep.subr.mxu0 %v144_v8  ;;  %v2209_v60 = vld [vmem:[#allocation2 + $0x8] sm:$0xff]  ;;  %v2211_v61 = vld [vmem:[#allocation2 + $0x10] sm:$0xff]  ;;  %v2215_v62 = vld [vmem:[#allocation2 + $0x18] sm:$0xff] }
  0x4c   :  { %1592 = vmatpush3.msra.mxu0 %v144_v8  ;;  %v2217_v63 = vld [vmem:[#allocation2 + $0x20] sm:$0xff]  ;;  %v2221_v0 = vld [vmem:[#allocation2 + $0x28] sm:$0xff]  ;;  %v2223_v1 = vld [vmem:[#allocation2 + $0x30] sm:$0xff] }
  0x4d   :  { %1593 = vmatprep.subr.mxu0 %v143_v9  ;;  %v2227_v2 = vld [vmem:[#allocation2 + $0x38] sm:$0xff]  ;;  %v2229_v3 = vld [vmem:[#allocation2 + $0x40] sm:$0xff]  ;;  %v2233_v4 = vld [vmem:[#allocation2 + $0x48] sm:$0xff] }
  0x4e   :  { %1594 = vmatpush3.msra.mxu0 %v143_v9  ;;  %v2235_v5 = vld [vmem:[#allocation2 + $0x50] sm:$0xff]  ;;  %v2239_v6 = vld [vmem:[#allocation2 + $0x58] sm:$0xff]  ;;  %v2241_v7 = vld [vmem:[#allocation2 + $0x60] sm:$0xff] }
  0x4f   :  { %1595 = vmatprep.subr.mxu0 %v142_v10  ;;  %v2245_v8 = vld [vmem:[#allocation2 + $0x68] sm:$0xff]  ;;  %v2247_v9 = vld [vmem:[#allocation2 + $0x70] sm:$0xff] }
  0x50   :  { %1596 = vmatpush3.msra.mxu0 %v142_v10  ;;  %v2251_v10 = vld [vmem:[#allocation2 + $0x78] sm:$0xff] }
  0x51   :  { %1597 = vmatprep.subr.mxu0 %v141_v11 }
  0x52   :  { %1598 = vmatpush3.msra.mxu0 %v141_v11  ;;  %v508_v11 = vld [vmem:[#allocation8 + $0x20] sm:$0xff] }
  0x53   :  { %1599 = vmatprep.subr.mxu0 %v140_v12 }
  0x54   :  { %1600 = vmatpush3.msra.mxu0 %v140_v12  ;;  %v507_v12 = vld [vmem:[#allocation8 + $0x18] sm:$0xff] }
  0x55   :  { %1601 = vmatprep.subr.mxu0 %v139_v13 }
  0x56   :  { %1602 = vmatpush3.msra.mxu0 %v139_v13  ;;  %v506_v13 = vld [vmem:[#allocation8 + $0x10] sm:$0xff] }
  0x57   :  { %1603 = vmatprep.subr.mxu0 %v138_v14 }
  0x58   :  { %1604 = vmatpush3.msra.mxu0 %v138_v14  ;;  %v505_v14 = vld [vmem:[#allocation8 + $0x8] sm:$0xff] }
  0x59   :  { %1605 = vmatprep.subr.mxu0 %v137_v15 }
  0x5a   :  { %1606 = vmatpush3.msra.mxu0 %v137_v15  ;;  %v504_v15 = vld [vmem:[#allocation8] sm:$0xff] }
  0x5b   :  { %1607 = vmatprep.subr.mxu0 %v136_v16 }
  0x5c   :  { %1608 = vmatpush3.msra.mxu0 %v136_v16  ;;  %v2258_v16 = vld [vmem:[%s2462_s3] ss:$0 sm:$0xff] }
  0x5d   :  { %1610 = vmatmul.mubr.f32.vlgmr.msra.gmra.mxu0 %v121_v17  ;;  %1689 = vmatprep.subr.mxu0 %v519_v33 }
  0x5e   :  { %1612 = vmatprep.mubr.f32.mxu0 %v122_v18  ;;  %1690 = vmatpush3.msra.mxu0 %v519_v33 }
  0x5f   :  { %1691 = vmatprep.subr.mxu0 %v518_v34 }
  0x60   :  { %1692 = vmatpush3.msra.mxu0 %v518_v34 }
  0x61   :  { %1613 = vmatmul.mubr.f32.gmra.mxu0 %v123_v19  ;;  %1693 = vmatprep.subr.mxu0 %v517_v35  ;;  %v2264_v19 = vld [vmem:[%s2463_s4] ss:$0 sm:$0xff] }
  0x62   :  { %1615 = vmatprep.mubr.f32.mxu0 %v124_v20  ;;  %1694 = vmatpush3.msra.mxu0 %v517_v35 }
  0x63   :  { %1695 = vmatprep.subr.mxu0 %v516_v36 }
  0x64   :  { %1696 = vmatpush3.msra.mxu0 %v516_v36 }
  0x65   :  { %1616 = vmatmul.mubr.f32.gmra.mxu0 %v125_v21  ;;  %1697 = vmatprep.subr.mxu0 %v515_v37 }
  0x66   :  { %1618 = vmatprep.mubr.f32.mxu0 %v126_v22  ;;  %1698 = vmatpush3.msra.mxu0 %v515_v37 }
  0x67   :  { %1699 = vmatprep.subr.mxu0 %v514_v38 }
  0x68   :  { %1700 = vmatpush3.msra.mxu0 %v514_v38 }
  0x69   :  { %1619 = vmatmul.mubr.f32.gmra.mxu0 %v127_v23  ;;  %1701 = vmatprep.subr.mxu0 %v513_v39 }
  0x6a   :  { %1621 = vmatprep.mubr.f32.mxu0 %v128_v24  ;;  %1702 = vmatpush3.msra.mxu0 %v513_v39 }
  0x6b   :  { %1703 = vmatprep.subr.mxu0 %v512_v40 }
  0x6c   :  { %1704 = vmatpush3.msra.mxu0 %v512_v40 }
  0x6d   :  { %1622 = vmatmul.mubr.f32.gmra.mxu0 %v129_v25  ;;  %1705 = vmatprep.subr.mxu0 %v511_v41 }
  0x6e   :  { %1624 = vmatprep.mubr.f32.mxu0 %v130_v26  ;;  %1706 = vmatpush3.msra.mxu0 %v511_v41 }
  0x6f   :  { %1707 = vmatprep.subr.mxu0 %v510_v42 }
  0x70   :  { %1708 = vmatpush3.msra.mxu0 %v510_v42 }
  0x71   :  { %1625 = vmatmul.mubr.f32.gmra.mxu0 %v131_v27  ;;  %1709 = vmatprep.subr.mxu0 %v509_v43 }
  0x72   :  { %1627 = vmatprep.mubr.f32.mxu0 %v132_v28  ;;  %1710 = vmatpush3.msra.mxu0 %v509_v43 }
  0x73   :  { %1711 = vmatprep.subr.mxu0 %v508_v11 }
  0x74   :  { %1712 = vmatpush3.msra.mxu0 %v508_v11 }
  0x75   :  { %1628 = vmatmul.mubr.f32.gmra.mxu0 %v133_v29  ;;  %1713 = vmatprep.subr.mxu0 %v507_v12 }
  0x76   :  { %1630 = vmatprep.mubr.f32.mxu0 %v134_v30  ;;  %1714 = vmatpush3.msra.mxu0 %v507_v12 }
  0x77   :  { %1715 = vmatprep.subr.mxu0 %v506_v13 }
  0x78   :  { %1716 = vmatpush3.msra.mxu0 %v506_v13 }
  0x79   :  { %1631 = vmatmul.mubr.f32.gmra.mxu0 %v135_v31  ;;  %1717 = vmatprep.subr.mxu0 %v505_v14 }
  0x7a   :  { %1718 = vmatpush3.msra.mxu0 %v505_v14 }
  0x7b   :  { %1719 = vmatprep.subr.mxu0 %v504_v15 }
  0x7c   :  { %1720 = vmatpush3.msra.mxu0 %v504_v15 }
 0x11d   :  { %v1611_v44 = vpop.f32.mrf.mxu0 }
 0x11f   :  { %v218_v45 = vpop.f32.mrf.mxu0 }
 0x121   :  { %v1614_v46 = vpop.f32.mrf.mxu0 }
 0x123   :  { %v228_v47 = vpop.f32.mrf.mxu0 }
 0x125   :  { %v1617_v48 = vpop.f32.mrf.mxu0 }
 0x127   :  { %v238_v49 = vpop.f32.mrf.mxu0 }
 0x129   :  { %v1620_v50 = vpop.f32.mrf.mxu0 }
 0x12b   :  { %v248_v51 = vpop.f32.mrf.mxu0 }
 0x12d   :  { %v1623_v52 = vpop.f32.mrf.mxu0 }
 0x12f   :  { %v258_v53 = vpop.f32.mrf.mxu0 }
 0x131   :  { %v1626_v54 = vpop.f32.mrf.mxu0 }
 0x133   :  { %v268_v55 = vpop.f32.mrf.mxu0 }
 0x135   :  { %v1629_v56 = vpop.f32.mrf.mxu0 }
 0x137   :  { %v278_v57 = vpop.f32.mrf.mxu0 }
 0x139   :  { %v1632_v58 = vpop.f32.mrf.mxu0 }
 0x13a   :  { %1633 = vmatprep.subr.mxu1 %v1632_v58 }
 0x13b   :  { %v288_v59 = vpop.f32.mrf.mxu0  ;;  %1634 = vmatpush3.msra.mxu1 %v1632_v58 }
 0x13c   :  { %1635 = vmatprep.subr.mxu1 %v288_v59 }
 0x13d   :  { %1636 = vmatpush3.msra.mxu1 %v288_v59 }
 0x13e   :  { %1637 = vmatprep.subr.mxu1 %v1629_v56 }
 0x13f   :  { %1638 = vmatpush3.msra.mxu1 %v1629_v56 }
 0x140   :  { %1639 = vmatprep.subr.mxu1 %v278_v57 }
 0x141   :  { %1640 = vmatpush3.msra.mxu1 %v278_v57 }
 0x142   :  { %1641 = vmatprep.subr.mxu1 %v1626_v54 }
 0x143   :  { %1642 = vmatpush3.msra.mxu1 %v1626_v54 }
 0x144   :  { %1643 = vmatprep.subr.mxu1 %v268_v55 }
 0x145   :  { %1644 = vmatpush3.msra.mxu1 %v268_v55 }
 0x146   :  { %1645 = vmatprep.subr.mxu1 %v1623_v52 }
 0x147   :  { %1646 = vmatpush3.msra.mxu1 %v1623_v52 }
 0x148   :  { %1647 = vmatprep.subr.mxu1 %v258_v53 }
 0x149   :  { %1648 = vmatpush3.msra.mxu1 %v258_v53 }
 0x14a   :  { %1649 = vmatprep.subr.mxu1 %v1620_v50 }
 0x14b   :  { %1650 = vmatpush3.msra.mxu1 %v1620_v50 }
 0x14c   :  { %1651 = vmatprep.subr.mxu1 %v248_v51 }
 0x14d   :  { %1652 = vmatpush3.msra.mxu1 %v248_v51 }
 0x14e   :  { %1653 = vmatprep.subr.mxu1 %v1617_v48 }
 0x14f   :  { %1654 = vmatpush3.msra.mxu1 %v1617_v48 }
 0x150   :  { %1655 = vmatprep.subr.mxu1 %v238_v49 }
 0x151   :  { %1656 = vmatpush3.msra.mxu1 %v238_v49 }
 0x152   :  { %1657 = vmatprep.subr.mxu1 %v1614_v46 }
 0x153   :  { %1658 = vmatpush3.msra.mxu1 %v1614_v46 }
 0x154   :  { %1659 = vmatprep.subr.mxu1 %v228_v47 }
 0x155   :  { %1660 = vmatpush3.msra.mxu1 %v228_v47 }
 0x156   :  { %1661 = vmatprep.subr.mxu1 %v1611_v44 }
 0x157   :  { %1662 = vmatpush3.msra.mxu1 %v1611_v44 }
 0x158   :  { %1663 = vmatprep.subr.mxu1 %v218_v45 }
 0x159   :  { %1664 = vmatpush3.msra.mxu1 %v218_v45 }
 0x15a   :  { %1666 = vmatmul.mubr.f32.vlgmr.msra.gmra.mxu1 %v2209_v60 }
 0x15b   :  { %1668 = vmatprep.mubr.f32.mxu1 %v2211_v61 }
 0x15e   :  { %1669 = vmatmul.mubr.f32.gmra.mxu1 %v2215_v62 }
 0x15f   :  { %1671 = vmatprep.mubr.f32.mxu1 %v2217_v63 }
 0x162   :  { %1672 = vmatmul.mubr.f32.gmra.mxu1 %v2221_v0 }
 0x163   :  { %1674 = vmatprep.mubr.f32.mxu1 %v2223_v1 }
 0x166   :  { %1675 = vmatmul.mubr.f32.gmra.mxu1 %v2227_v2 }
 0x167   :  { %1677 = vmatprep.mubr.f32.mxu1 %v2229_v3 }
 0x16a   :  { %1678 = vmatmul.mubr.f32.gmra.mxu1 %v2233_v4 }
 0x16b   :  { %1680 = vmatprep.mubr.f32.mxu1 %v2235_v5 }
 0x16e   :  { %1681 = vmatmul.mubr.f32.gmra.mxu1 %v2239_v6 }
 0x16f   :  { %1683 = vmatprep.mubr.f32.mxu1 %v2241_v7 }
 0x172   :  { %1684 = vmatmul.mubr.f32.gmra.mxu1 %v2245_v8 }
 0x173   :  { %1686 = vmatprep.mubr.f32.mxu1 %v2247_v9 }
 0x176   :  { %1687 = vmatmul.mubr.f32.gmra.mxu1 %v2251_v10 }
 0x177   :  { %1777 = vmatprep.mubr.f32.mxu1 %v2206_v32 }
 0x21a   :  { %v1667_v17 = vpop.f32.mrf.mxu1 }
 0x21b   :  { %v450_v18 = vmul.f32 %v1667_v17, %v2258_v16 }
 0x21c   :  { %v363_v20 = vpop.f32.mrf.mxu1 }
 0x21d   :  { %v449_v21 = vmul.f32 %v2258_v16, %v363_v20  ;;  %v473_v22 = vadd.f32 %v2264_v19, %v450_v18 }
 0x21e   :  { %v1670_v23 = vpop.f32.mrf.mxu1 }
 0x21f   :  { %v472_v24 = vadd.f32 %v2264_v19, %v449_v21  ;;  %v452_v25 = vmul.f32 %v1670_v23, %v2258_v16  ;;  %v489_v29 = vmax.f32 %v473_v22, 0.0 }
 0x220   :  { %v373_v26 = vpop.f32.mrf.mxu1 }
 0x221   :  { %v488_v27 = vmax.f32 %v472_v24, 0.0  ;;  %v451_v28 = vmul.f32 %v2258_v16, %v373_v26  ;;  %v475_v30 = vadd.f32 %v2264_v19, %v452_v25 }
 0x222   :  { %v1673_v31 = vpop.f32.mrf.mxu1 }
 0x223   :  { %v474_v33 = vadd.f32 %v2264_v19, %v451_v28  ;;  %v454_v34 = vmul.f32 %v1673_v31, %v2258_v16  ;;  %1721 = vmatprep.mubr.f32.mxu0 %v488_v27  ;;  %v491_v38 = vmax.f32 %v475_v30, 0.0 }
 0x224   :  { %v383_v35 = vpop.f32.mrf.mxu1  ;;  %1722 = vmatmul.mubr.f32.vlgmr.msra.gmra.mxu0 %v489_v29 }
 0x225   :  { %v490_v36 = vmax.f32 %v474_v33, 0.0  ;;  %v453_v37 = vmul.f32 %v2258_v16, %v383_v35  ;;  %v477_v39 = vadd.f32 %v2264_v19, %v454_v34 }
 0x226   :  { %v1676_v40 = vpop.f32.mrf.mxu1 }
 0x227   :  { %v476_v41 = vadd.f32 %v2264_v19, %v453_v37  ;;  %v456_v42 = vmul.f32 %v1676_v40, %v2258_v16  ;;  %1724 = vmatprep.mubr.f32.mxu0 %v490_v36  ;;  %v493_v46 = vmax.f32 %v477_v39, 0.0  ;;  %v887_v37 = vld [vmem:[#allocation10 + $0x78] sm:$0xff]  ;;  %v885_v39 = vld [vmem:[#allocation10 + $0x68] sm:$0xff]  ;;  %v884_v40 = vld [vmem:[#allocation10 + $0x60] sm:$0xff] }
 0x228   :  { %v393_v43 = vpop.f32.mrf.mxu1  ;;  %1725 = vmatmul.mubr.f32.gmra.mxu0 %v491_v38  ;;  %v886_v38 = vld [vmem:[#allocation10 + $0x70] sm:$0xff]  ;;  %1801 = vmatprep.subr.mxu0 %v887_v37 }
 0x229   :  { %v492_v44 = vmax.f32 %v476_v41, 0.0  ;;  %v455_v45 = vmul.f32 %v2258_v16, %v393_v43  ;;  %v479_v47 = vadd.f32 %v2264_v19, %v456_v42  ;;  %1802 = vmatpush3.msra.mxu0 %v887_v37  ;;  %v881_v41 = vld [vmem:[#allocation10 + $0x48] sm:$0xff]  ;;  %v880_v42 = vld [vmem:[#allocation10 + $0x40] sm:$0xff]  ;;  %v879_v43 = vld [vmem:[#allocation10 + $0x38] sm:$0xff] }
 0x22a   :  { %v1679_v48 = vpop.f32.mrf.mxu1  ;;  %1803 = vmatprep.subr.mxu0 %v886_v38 }
 0x22b   :  { %v478_v49 = vadd.f32 %v2264_v19, %v455_v45  ;;  %v458_v50 = vmul.f32 %v1679_v48, %v2258_v16  ;;  %1727 = vmatprep.mubr.f32.mxu0 %v492_v44  ;;  %v495_v54 = vmax.f32 %v479_v47, 0.0  ;;  %1804 = vmatpush3.msra.mxu0 %v886_v38  ;;  %v878_v44 = vld [vmem:[#allocation10 + $0x30] sm:$0xff]  ;;  %v877_v45 = vld [vmem:[#allocation10 + $0x28] sm:$0xff] }
 0x22c   :  { %v403_v51 = vpop.f32.mrf.mxu1  ;;  %1728 = vmatmul.mubr.f32.gmra.mxu0 %v493_v46  ;;  %1805 = vmatprep.subr.mxu0 %v885_v39 }
 0x22d   :  { %v494_v52 = vmax.f32 %v478_v49, 0.0  ;;  %v457_v53 = vmul.f32 %v2258_v16, %v403_v51  ;;  %v481_v55 = vadd.f32 %v2264_v19, %v458_v50  ;;  %1806 = vmatpush3.msra.mxu0 %v885_v39 }
 0x22e   :  { %v1682_v56 = vpop.f32.mrf.mxu1  ;;  %1807 = vmatprep.subr.mxu0 %v884_v40 }
 0x22f   :  { %v480_v57 = vadd.f32 %v2264_v19, %v457_v53  ;;  %v460_v58 = vmul.f32 %v1682_v56, %v2258_v16  ;;  %1730 = vmatprep.mubr.f32.mxu0 %v494_v52  ;;  %v497_v13 = vmax.f32 %v481_v55, 0.0  ;;  %1808 = vmatpush3.msra.mxu0 %v884_v40 }
 0x230   :  { %v413_v59 = vpop.f32.mrf.mxu1  ;;  %1731 = vmatmul.mubr.f32.gmra.mxu0 %v495_v54 }
 0x231   :  { %v496_v11 = vmax.f32 %v480_v57, 0.0  ;;  %v459_v12 = vmul.f32 %v2258_v16, %v413_v59  ;;  %v483_v14 = vadd.f32 %v2264_v19, %v460_v58 }
 0x232   :  { %v1685_v15 = vpop.f32.mrf.mxu1 }
 0x233   :  { %v482_v17 = vadd.f32 %v2264_v19, %v459_v12  ;;  %v462_v18 = vmul.f32 %v1685_v15, %v2258_v16  ;;  %1733 = vmatprep.mubr.f32.mxu0 %v496_v11  ;;  %v499_v23 = vmax.f32 %v483_v14, 0.0  ;;  %v875_v14 = vld [vmem:[#allocation10 + $0x18] sm:$0xff]  ;;  %v874_v15 = vld [vmem:[#allocation10 + $0x10] sm:$0xff] }
 0x234   :  { %v423_v20 = vpop.f32.mrf.mxu1  ;;  %1734 = vmatmul.mubr.f32.gmra.mxu0 %v497_v13  ;;  %v876_v13 = vld [vmem:[#allocation10 + $0x20] sm:$0xff] }
 0x235   :  { %v498_v21 = vmax.f32 %v482_v17, 0.0  ;;  %v461_v22 = vmul.f32 %v2258_v16, %v423_v20  ;;  %v485_v24 = vadd.f32 %v2264_v19, %v462_v18  ;;  %v873_v17 = vld [vmem:[#allocation10 + $0x8] sm:$0xff]  ;;  %v872_v18 = vld [vmem:[#allocation10] sm:$0xff] }
 0x236   :  { %v1688_v25 = vpop.f32.mrf.mxu1  ;;  %v2316_v20 = vld [vmem:[%s2465_s6] ss:$0 sm:$0xff] }
 0x237   :  { %v484_v26 = vadd.f32 %v2264_v19, %v461_v22  ;;  %v464_v27 = vmul.f32 %v1688_v25, %v2258_v16  ;;  %1736 = vmatprep.mubr.f32.mxu0 %v498_v21  ;;  %v501_v31 = vmax.f32 %v485_v24, 0.0  ;;  %v2322_v22 = vld [vmem:[%s2466_s7] ss:$0 sm:$0xff] }
 0x238   :  { %v433_v28 = vpop.f32.mrf.mxu1  ;;  %1737 = vmatmul.mubr.f32.gmra.mxu0 %v499_v23 }
 0x239   :  { %v500_v29 = vmax.f32 %v484_v26, 0.0  ;;  %v463_v30 = vmul.f32 %v2258_v16, %v433_v28  ;;  %v487_v33 = vadd.f32 %v2264_v19, %v464_v27  ;;  %v883_v16 = vld [vmem:[#allocation10 + $0x58] sm:$0xff] }
 0x23a   :  { %1809 = vmatprep.subr.mxu0 %v883_v16 }
 0x23b   :  { %v486_v34 = vadd.f32 %v2264_v19, %v463_v30  ;;  %1739 = vmatprep.mubr.f32.mxu0 %v500_v29  ;;  %v503_v36 = vmax.f32 %v487_v33, 0.0  ;;  %v882_v19 = vld [vmem:[#allocation10 + $0x50] sm:$0xff]  ;;  %1810 = vmatpush3.msra.mxu0 %v883_v16 }
 0x23c   :  { %1740 = vmatmul.mubr.f32.gmra.mxu0 %v501_v31  ;;  %1811 = vmatprep.subr.mxu0 %v882_v19 }
 0x23d   :  { %v502_v35 = vmax.f32 %v486_v34, 0.0  ;;  %1812 = vmatpush3.msra.mxu0 %v882_v19 }
 0x23e   :  { %1813 = vmatprep.subr.mxu0 %v881_v41 }
 0x23f   :  { %1742 = vmatprep.mubr.f32.mxu0 %v502_v35  ;;  %1814 = vmatpush3.msra.mxu0 %v881_v41 }
 0x240   :  { %1743 = vmatmul.mubr.f32.gmra.mxu0 %v503_v36  ;;  %1815 = vmatprep.subr.mxu0 %v880_v42 }
 0x241   :  { %1816 = vmatpush3.msra.mxu0 %v880_v42 }
 0x242   :  { %1817 = vmatprep.subr.mxu0 %v879_v43 }
 0x243   :  { %1818 = vmatpush3.msra.mxu0 %v879_v43 }
 0x244   :  { %1819 = vmatprep.subr.mxu0 %v878_v44 }
 0x245   :  { %1820 = vmatpush3.msra.mxu0 %v878_v44 }
 0x246   :  { %1821 = vmatprep.subr.mxu0 %v877_v45 }
 0x247   :  { %1822 = vmatpush3.msra.mxu0 %v877_v45 }
 0x248   :  { %1823 = vmatprep.subr.mxu0 %v876_v13 }
 0x249   :  { %1824 = vmatpush3.msra.mxu0 %v876_v13 }
 0x24a   :  { %1825 = vmatprep.subr.mxu0 %v875_v14 }
 0x24b   :  { %1826 = vmatpush3.msra.mxu0 %v875_v14 }
 0x24c   :  { %1827 = vmatprep.subr.mxu0 %v874_v15 }
 0x24d   :  { %1828 = vmatpush3.msra.mxu0 %v874_v15 }
 0x24e   :  { %1829 = vmatprep.subr.mxu0 %v873_v17 }
 0x24f   :  { %1830 = vmatpush3.msra.mxu0 %v873_v17 }
 0x250   :  { %1831 = vmatprep.subr.mxu0 %v872_v18 }
 0x251   :  { %1832 = vmatpush3.msra.mxu0 %v872_v18 }
 0x2e4   :  { %v1723_v46 = vpop.f32.mrf.mxu0 }
 0x2e6   :  { %v586_v47 = vpop.f32.mrf.mxu0 }
 0x2e8   :  { %v1726_v48 = vpop.f32.mrf.mxu0 }
 0x2ea   :  { %v596_v49 = vpop.f32.mrf.mxu0 }
 0x2ec   :  { %v1729_v50 = vpop.f32.mrf.mxu0 }
 0x2ee   :  { %v606_v51 = vpop.f32.mrf.mxu0 }
 0x2f0   :  { %v1732_v52 = vpop.f32.mrf.mxu0 }
 0x2f2   :  { %v616_v53 = vpop.f32.mrf.mxu0 }
 0x2f4   :  { %v1735_v54 = vpop.f32.mrf.mxu0 }
 0x2f6   :  { %v626_v55 = vpop.f32.mrf.mxu0 }
 0x2f8   :  { %v1738_v56 = vpop.f32.mrf.mxu0 }
 0x2fa   :  { %v636_v57 = vpop.f32.mrf.mxu0 }
 0x2fc   :  { %v1741_v58 = vpop.f32.mrf.mxu0 }
 0x2fe   :  { %v646_v59 = vpop.f32.mrf.mxu0 }
 0x300   :  { %v1744_v11 = vpop.f32.mrf.mxu0 }
 0x301   :  { %1745 = vmatprep.subr.mxu1 %v1744_v11 }
 0x302   :  { %v656_v12 = vpop.f32.mrf.mxu0  ;;  %1746 = vmatpush3.msra.mxu1 %v1744_v11 }
 0x303   :  { %1747 = vmatprep.subr.mxu1 %v656_v12 }
 0x304   :  { %1748 = vmatpush3.msra.mxu1 %v656_v12 }
 0x305   :  { %1749 = vmatprep.subr.mxu1 %v1741_v58 }
 0x306   :  { %1750 = vmatpush3.msra.mxu1 %v1741_v58 }
 0x307   :  { %1751 = vmatprep.subr.mxu1 %v646_v59 }
 0x308   :  { %1752 = vmatpush3.msra.mxu1 %v646_v59 }
 0x309   :  { %1753 = vmatprep.subr.mxu1 %v1738_v56 }
 0x30a   :  { %1754 = vmatpush3.msra.mxu1 %v1738_v56 }
 0x30b   :  { %1755 = vmatprep.subr.mxu1 %v636_v57 }
 0x30c   :  { %1756 = vmatpush3.msra.mxu1 %v636_v57 }
 0x30d   :  { %1757 = vmatprep.subr.mxu1 %v1735_v54 }
 0x30e   :  { %1758 = vmatpush3.msra.mxu1 %v1735_v54 }
 0x30f   :  { %1759 = vmatprep.subr.mxu1 %v626_v55 }
 0x310   :  { %1760 = vmatpush3.msra.mxu1 %v626_v55 }
 0x311   :  { %1761 = vmatprep.subr.mxu1 %v1732_v52 }
 0x312   :  { %1762 = vmatpush3.msra.mxu1 %v1732_v52 }
 0x313   :  { %1763 = vmatprep.subr.mxu1 %v616_v53 }
 0x314   :  { %1764 = vmatpush3.msra.mxu1 %v616_v53 }
 0x315   :  { %1765 = vmatprep.subr.mxu1 %v1729_v50 }
 0x316   :  { %1766 = vmatpush3.msra.mxu1 %v1729_v50 }
 0x317   :  { %1767 = vmatprep.subr.mxu1 %v606_v51 }
 0x318   :  { %1768 = vmatpush3.msra.mxu1 %v606_v51 }
 0x319   :  { %1769 = vmatprep.subr.mxu1 %v1726_v48 }
 0x31a   :  { %1770 = vmatpush3.msra.mxu1 %v1726_v48 }
 0x31b   :  { %1771 = vmatprep.subr.mxu1 %v596_v49 }
 0x31c   :  { %1772 = vmatpush3.msra.mxu1 %v596_v49 }
 0x31d   :  { %1773 = vmatprep.subr.mxu1 %v1723_v46 }
 0x31e   :  { %1774 = vmatpush3.msra.mxu1 %v1723_v46 }
 0x31f   :  { %1775 = vmatprep.subr.mxu1 %v586_v47 }
 0x320   :  { %1776 = vmatpush3.msra.mxu1 %v586_v47 }
 0x321   :  { %1778 = vmatmul.mubr.f32.vlgmr.msra.gmra.mxu1 %v2209_v60 }
 0x322   :  { %1780 = vmatprep.mubr.f32.mxu1 %v2211_v61 }
 0x325   :  { %1781 = vmatmul.mubr.f32.gmra.mxu1 %v2215_v62 }
 0x326   :  { %1783 = vmatprep.mubr.f32.mxu1 %v2217_v63 }
 0x329   :  { %1784 = vmatmul.mubr.f32.gmra.mxu1 %v2221_v0 }
 0x32a   :  { %1786 = vmatprep.mubr.f32.mxu1 %v2223_v1 }
 0x32d   :  { %1787 = vmatmul.mubr.f32.gmra.mxu1 %v2227_v2 }
 0x32e   :  { %1789 = vmatprep.mubr.f32.mxu1 %v2229_v3 }
 0x331   :  { %1790 = vmatmul.mubr.f32.gmra.mxu1 %v2233_v4 }
 0x332   :  { %1792 = vmatprep.mubr.f32.mxu1 %v2235_v5 }
 0x335   :  { %1793 = vmatmul.mubr.f32.gmra.mxu1 %v2239_v6 }
 0x336   :  { %1795 = vmatprep.mubr.f32.mxu1 %v2241_v7 }
 0x339   :  { %1796 = vmatmul.mubr.f32.gmra.mxu1 %v2245_v8 }
 0x33a   :  { %1798 = vmatprep.mubr.f32.mxu1 %v2247_v9 }
 0x33d   :  { %1799 = vmatmul.mubr.f32.gmra.mxu1 %v2251_v10 }
 0x33e   :  { %1889 = vmatprep.mubr.f32.mxu1 %v2206_v32 }
 0x3e1   :  { %v1779_v32 = vpop.f32.mrf.mxu1 }
 0x3e2   :  { %v818_v21 = vmul.f32 %v1779_v32, %v2316_v20 }
 0x3e3   :  { %v731_v23 = vpop.f32.mrf.mxu1 }
 0x3e4   :  { %v817_v24 = vmul.f32 %v2316_v20, %v731_v23  ;;  %v841_v25 = vadd.f32 %v2322_v22, %v818_v21 }
 0x3e5   :  { %v1782_v26 = vpop.f32.mrf.mxu1 }
 0x3e6   :  { %v840_v27 = vadd.f32 %v2322_v22, %v817_v24  ;;  %v820_v28 = vmul.f32 %v1782_v26, %v2316_v20  ;;  %v857_v33 = vmax.f32 %v841_v25, 0.0 }
 0x3e7   :  { %v741_v29 = vpop.f32.mrf.mxu1 }
 0x3e8   :  { %v856_v30 = vmax.f32 %v840_v27, 0.0  ;;  %v819_v31 = vmul.f32 %v2316_v20, %v741_v29  ;;  %v843_v34 = vadd.f32 %v2322_v22, %v820_v28 }
 0x3e9   :  { %v1785_v35 = vpop.f32.mrf.mxu1 }
 0x3ea   :  { %v842_v36 = vadd.f32 %v2322_v22, %v819_v31  ;;  %v822_v37 = vmul.f32 %v1785_v35, %v2316_v20  ;;  %1833 = vmatprep.mubr.f32.mxu0 %v856_v30  ;;  %v859_v16 = vmax.f32 %v843_v34, 0.0 }
 0x3eb   :  { %v751_v38 = vpop.f32.mrf.mxu1  ;;  %1834 = vmatmul.mubr.f32.vlgmr.msra.gmra.mxu0 %v857_v33 }
 0x3ec   :  { %v858_v39 = vmax.f32 %v842_v36, 0.0  ;;  %v821_v40 = vmul.f32 %v2316_v20, %v751_v38  ;;  %v845_v19 = vadd.f32 %v2322_v22, %v822_v37 }
 0x3ed   :  { %v1788_v41 = vpop.f32.mrf.mxu1 }
 0x3ee   :  { %v844_v42 = vadd.f32 %v2322_v22, %v821_v40  ;;  %v824_v43 = vmul.f32 %v1788_v41, %v2316_v20  ;;  %1836 = vmatprep.mubr.f32.mxu0 %v858_v39  ;;  %v861_v47 = vmax.f32 %v845_v19, 0.0 }
 0x3ef   :  { %v761_v44 = vpop.f32.mrf.mxu1  ;;  %1837 = vmatmul.mubr.f32.gmra.mxu0 %v859_v16 }
 0x3f0   :  { %v860_v45 = vmax.f32 %v844_v42, 0.0  ;;  %v823_v46 = vmul.f32 %v2316_v20, %v761_v44  ;;  %v847_v48 = vadd.f32 %v2322_v22, %v824_v43 }
 0x3f1   :  { %v1791_v49 = vpop.f32.mrf.mxu1 }
 0x3f2   :  { %v846_v50 = vadd.f32 %v2322_v22, %v823_v46  ;;  %v826_v51 = vmul.f32 %v1791_v49, %v2316_v20  ;;  %1839 = vmatprep.mubr.f32.mxu0 %v860_v45  ;;  %v863_v55 = vmax.f32 %v847_v48, 0.0 }
 0x3f3   :  { %v771_v52 = vpop.f32.mrf.mxu1  ;;  %1840 = vmatmul.mubr.f32.gmra.mxu0 %v861_v47 }
 0x3f4   :  { %v862_v53 = vmax.f32 %v846_v50, 0.0  ;;  %v825_v54 = vmul.f32 %v2316_v20, %v771_v52  ;;  %v849_v56 = vadd.f32 %v2322_v22, %v826_v51 }
 0x3f5   :  { %v1794_v57 = vpop.f32.mrf.mxu1 }
 0x3f6   :  { %v848_v58 = vadd.f32 %v2322_v22, %v825_v54  ;;  %v828_v59 = vmul.f32 %v1794_v57, %v2316_v20  ;;  %1842 = vmatprep.mubr.f32.mxu0 %v862_v53  ;;  %v865_v14 = vmax.f32 %v849_v56, 0.0 }
 0x3f7   :  { %v781_v11 = vpop.f32.mrf.mxu1  ;;  %1843 = vmatmul.mubr.f32.gmra.mxu0 %v863_v55 }
 0x3f8   :  { %v864_v12 = vmax.f32 %v848_v58, 0.0  ;;  %v827_v13 = vmul.f32 %v2316_v20, %v781_v11  ;;  %v851_v15 = vadd.f32 %v2322_v22, %v828_v59 }
 0x3f9   :  { %v1797_v17 = vpop.f32.mrf.mxu1 }
 0x3fa   :  { %v850_v18 = vadd.f32 %v2322_v22, %v827_v13  ;;  %v830_v32 = vmul.f32 %v1797_v17, %v2316_v20  ;;  %1845 = vmatprep.mubr.f32.mxu0 %v864_v12  ;;  %v867_v25 = vmax.f32 %v851_v15, 0.0 }
 0x3fb   :  { %v791_v21 = vpop.f32.mrf.mxu1  ;;  %1846 = vmatmul.mubr.f32.gmra.mxu0 %v865_v14 }
 0x3fc   :  { %v866_v23 = vmax.f32 %v850_v18, 0.0  ;;  %v829_v24 = vmul.f32 %v2316_v20, %v791_v21  ;;  %v853_v26 = vadd.f32 %v2322_v22, %v830_v32 }
 0x3fd   :  { %v1800_v27 = vpop.f32.mrf.mxu1 }
 0x3fe   :  { %v852_v28 = vadd.f32 %v2322_v22, %v829_v24  ;;  %v832_v29 = vmul.f32 %v1800_v27, %v2316_v20  ;;  %1848 = vmatprep.mubr.f32.mxu0 %v866_v23  ;;  %v869_v34 = vmax.f32 %v853_v26, 0.0 }
 0x3ff   :  { %v801_v30 = vpop.f32.mrf.mxu1  ;;  %1849 = vmatmul.mubr.f32.gmra.mxu0 %v867_v25 }
 0x400   :  { %v868_v31 = vmax.f32 %v852_v28, 0.0  ;;  %v831_v33 = vmul.f32 %v2316_v20, %v801_v30  ;;  %v855_v35 = vadd.f32 %v2322_v22, %v832_v29 }
 0x402   :  { %v854_v36 = vadd.f32 %v2322_v22, %v831_v33  ;;  %1851 = vmatprep.mubr.f32.mxu0 %v868_v31  ;;  %v871_v38 = vmax.f32 %v855_v35, 0.0 }
 0x403   :  { %1852 = vmatmul.mubr.f32.gmra.mxu0 %v869_v34 }
 0x404   :  { %v870_v37 = vmax.f32 %v854_v36, 0.0 }
 0x406   :  { %1854 = vmatprep.mubr.f32.mxu0 %v870_v37 }
 0x407   :  { %1855 = vmatmul.mubr.f32.gmra.mxu0 %v871_v38 }
 0x4ab   :  { %v1835_v39 = vpop.f32.mrf.mxu0 }
 0x4ad   :  { %v954_v40 = vpop.f32.mrf.mxu0 }
 0x4af   :  { %v1838_v16 = vpop.f32.mrf.mxu0 }
 0x4b1   :  { %v964_v19 = vpop.f32.mrf.mxu0 }
 0x4b3   :  { %v1841_v41 = vpop.f32.mrf.mxu0 }
 0x4b5   :  { %v974_v42 = vpop.f32.mrf.mxu0 }
 0x4b7   :  { %v1844_v43 = vpop.f32.mrf.mxu0 }
 0x4b9   :  { %v984_v44 = vpop.f32.mrf.mxu0 }
 0x4bb   :  { %v1847_v20 = vpop.f32.mrf.mxu0 }
 0x4bd   :  { %v994_v45 = vpop.f32.mrf.mxu0 }
 0x4bf   :  { %v1850_v46 = vpop.f32.mrf.mxu0 }
 0x4c1   :  { %v1004_v47 = vpop.f32.mrf.mxu0 }
 0x4c3   :  { %v1853_v48 = vpop.f32.mrf.mxu0 }
 0x4c5   :  { %v1014_v22 = vpop.f32.mrf.mxu0 }
 0x4c7   :  { %v1856_v49 = vpop.f32.mrf.mxu0 }
 0x4c8   :  { %1857 = vmatprep.subr.mxu1 %v1856_v49 }
 0x4c9   :  { %v1024_v50 = vpop.f32.mrf.mxu0  ;;  %1858 = vmatpush3.msra.mxu1 %v1856_v49 }
 0x4ca   :  { %1859 = vmatprep.subr.mxu1 %v1024_v50 }
 0x4cb   :  { %1860 = vmatpush3.msra.mxu1 %v1024_v50 }
 0x4cc   :  { %1861 = vmatprep.subr.mxu1 %v1853_v48 }
 0x4cd   :  { %1862 = vmatpush3.msra.mxu1 %v1853_v48 }
 0x4ce   :  { %1863 = vmatprep.subr.mxu1 %v1014_v22 }
 0x4cf   :  { %1864 = vmatpush3.msra.mxu1 %v1014_v22 }
 0x4d0   :  { %1865 = vmatprep.subr.mxu1 %v1850_v46 }
 0x4d1   :  { %1866 = vmatpush3.msra.mxu1 %v1850_v46 }
 0x4d2   :  { %1867 = vmatprep.subr.mxu1 %v1004_v47 }
 0x4d3   :  { %1868 = vmatpush3.msra.mxu1 %v1004_v47 }
 0x4d4   :  { %1869 = vmatprep.subr.mxu1 %v1847_v20 }
 0x4d5   :  { %1870 = vmatpush3.msra.mxu1 %v1847_v20 }
 0x4d6   :  { %1871 = vmatprep.subr.mxu1 %v994_v45 }
 0x4d7   :  { %1872 = vmatpush3.msra.mxu1 %v994_v45 }
 0x4d8   :  { %1873 = vmatprep.subr.mxu1 %v1844_v43 }
 0x4d9   :  { %1874 = vmatpush3.msra.mxu1 %v1844_v43 }
 0x4da   :  { %1875 = vmatprep.subr.mxu1 %v984_v44 }
 0x4db   :  { %1876 = vmatpush3.msra.mxu1 %v984_v44 }
 0x4dc   :  { %1877 = vmatprep.subr.mxu1 %v1841_v41 }
 0x4dd   :  { %1878 = vmatpush3.msra.mxu1 %v1841_v41 }
 0x4de   :  { %1879 = vmatprep.subr.mxu1 %v974_v42 }
 0x4df   :  { %1880 = vmatpush3.msra.mxu1 %v974_v42 }
 0x4e0   :  { %1881 = vmatprep.subr.mxu1 %v1838_v16 }
 0x4e1   :  { %1882 = vmatpush3.msra.mxu1 %v1838_v16 }
 0x4e2   :  { %1883 = vmatprep.subr.mxu1 %v964_v19 }
 0x4e3   :  { %1884 = vmatpush3.msra.mxu1 %v964_v19 }
 0x4e4   :  { %1885 = vmatprep.subr.mxu1 %v1835_v39 }
 0x4e5   :  { %1886 = vmatpush3.msra.mxu1 %v1835_v39 }
 0x4e6   :  { %1887 = vmatprep.subr.mxu1 %v954_v40 }
 0x4e7   :  { %1888 = vmatpush3.msra.mxu1 %v954_v40 }
 0x4e8   :  { %1890 = vmatmul.mubr.f32.vlgmr.msra.gmra.mxu1 %v2209_v60  ;;  %v1384_v60 = vld [vmem:[%s2468_s9] ss:$0 sm:$0xff]  ;;  %s2120_s9 = smov [#allocation11]  }
 0x4e9   :  { %1892 = vmatprep.mubr.f32.mxu1 %v2211_v61  ;;  %s1366_s23 = sshll.u32 %s2120_s9, 4  ;;  %s1367_s23 = int_to_ptr.vmem [resolvable:$true] %s1366_s23 }
 0x4ea   :  { %s2085_s24 = scalar_lea.vmem %s1367_s23, 2048  ;;  %p2090_p12 = scmp.lt.s32.totalorder %s1367_s23, %s1367_s23 }
 0x4eb   :  { %p2086_p11 = scmp.ne.s32.totalorder %s1367_s23, %s2085_s24  ;;  %p2091_p13 = scmp.lt.s32.totalorder %s2085_s24, %s2085_s24 }
 0x4ec   :  { %1893 = vmatmul.mubr.f32.gmra.mxu1 %v2215_v62 }
 0x4ed   :  { %1895 = vmatprep.mubr.f32.mxu1 %v2217_v63  ;;  %p2092_p0 = por %p2091_p13, %p2090_p12 }
 0x4ef   :  { %p2093_p1 = pnand %p2092_p0, %p2086_p11 }
 0x4f0   :  { %1896 = vmatmul.mubr.f32.gmra.mxu1 %v2221_v0 }
 0x4f1   :  { %1898 = vmatprep.mubr.f32.mxu1 %v2223_v1 }
 0x4f4   :  { %1899 = vmatmul.mubr.f32.gmra.mxu1 %v2227_v2 }
 0x4f5   :  { %1901 = vmatprep.mubr.f32.mxu1 %v2229_v3 }
 0x4f8   :  { %1902 = vmatmul.mubr.f32.gmra.mxu1 %v2233_v4 }
 0x4f9   :  { %1904 = vmatprep.mubr.f32.mxu1 %v2235_v5 }
 0x4fc   :  { %1905 = vmatmul.mubr.f32.gmra.mxu1 %v2239_v6 }
 0x4fd   :  { %1907 = vmatprep.mubr.f32.mxu1 %v2241_v7 }
 0x500   :  { %1908 = vmatmul.mubr.f32.gmra.mxu1 %v2245_v8 }
 0x501   :  { %1910 = vmatprep.mubr.f32.mxu1 %v2247_v9 }
 0x504   :  { %1911 = vmatmul.mubr.f32.gmra.mxu1 %v2251_v10 }
 0x5a8   :  { %v1891_v61 = vpop.f32.mrf.mxu1 }
 0x5a9   :  { %v1112_v62 = vadd.f32 %v1891_v61, %v1384_v60 }
 0x5aa   :  { %v1106_v63 = vpop.f32.mrf.mxu1 }
 0x5ab   :  { %1187 = vmax.xlane.f32.xlu0 %v1112_v62  ;;  %v1107_v1 = vadd.f32 %v1384_v60, %v1106_v63 }
 0x5ac   :  { %v1894_v0 = vpop.f32.mrf.mxu1 }
 0x5ad   :  { %v1122_v2 = vadd.f32 %v1894_v0, %v1384_v60 }
 0x5ae   :  { %v1116_v3 = vpop.f32.mrf.mxu1 }
 0x5af   :  { %1191 = vmax.xlane.f32.xlu1 %v1122_v2  ;;  %1185 = vmax.xlane.f32.xlu0 %v1107_v1  ;;  %v1117_v5 = vadd.f32 %v1384_v60, %v1116_v3 }
 0x5b0   :  { %v1897_v4 = vpop.f32.mrf.mxu1 }
 0x5b1   :  { %v1132_v9 = vadd.f32 %v1897_v4, %v1384_v60 }
 0x5b2   :  { %v1126_v6 = vpop.f32.mrf.mxu1 }
 0x5b3   :  { %v1127_v7 = vadd.f32 %v1384_v60, %v1126_v6  ;;  %1189 = vmax.xlane.f32.xlu1 %v1117_v5 }
 0x5b4   :  { %v1900_v8 = vpop.f32.mrf.mxu1 }
 0x5b5   :  { %1193 = vmax.xlane.f32.xlu0 %v1127_v7  ;;  %v1142_v53 = vadd.f32 %v1900_v8, %v1384_v60 }
 0x5b6   :  { %v1136_v10 = vpop.f32.mrf.mxu1 }
 0x5b7   :  { %v1137_v51 = vadd.f32 %v1384_v60, %v1136_v10  ;;  %1195 = vmax.xlane.f32.xlu1 %v1132_v9 }
 0x5b8   :  { %v1903_v52 = vpop.f32.mrf.mxu1 }
 0x5b9   :  { %1197 = vmax.xlane.f32.xlu0 %v1137_v51  ;;  %v1152_v57 = vadd.f32 %v1903_v52, %v1384_v60 }
 0x5ba   :  { %v1146_v54 = vpop.f32.mrf.mxu1 }
 0x5bb   :  { %v1147_v55 = vadd.f32 %v1384_v60, %v1146_v54  ;;  %1199 = vmax.xlane.f32.xlu1 %v1142_v53 }
 0x5bc   :  { %v1906_v56 = vpop.f32.mrf.mxu1 }
 0x5bd   :  { %1201 = vmax.xlane.f32.xlu0 %v1147_v55  ;;  %v1162_v12 = vadd.f32 %v1906_v56, %v1384_v60 }
 0x5be   :  { %v1156_v58 = vpop.f32.mrf.mxu1 }
 0x5bf   :  { %v1157_v59 = vadd.f32 %v1384_v60, %v1156_v58  ;;  %1203 = vmax.xlane.f32.xlu1 %v1152_v57 }
 0x5c0   :  { %v1909_v11 = vpop.f32.mrf.mxu1 }
 0x5c1   :  { %1205 = vmax.xlane.f32.xlu0 %v1157_v59  ;;  %v2375_v17 = vadd.f32 %v1909_v11, %v1384_v60 }
 0x5c2   :  { %v1166_v13 = vpop.f32.mrf.mxu1 }
 0x5c3   :  { %v2373_v14 = vadd.f32 %v1384_v60, %v1166_v13  ;;  %1207 = vmax.xlane.f32.xlu1 %v1162_v12 }
 0x5c4   :  { %v1912_v15 = vpop.f32.mrf.mxu1 }
 0x5c5   :  { %1209 = vmax.xlane.f32.xlu0 %v2373_v14  ;;  %v2381_v21 = vadd.f32 %v1912_v15, %v1384_v60 }
 0x5c6   :  { %v1176_v18 = vpop.f32.mrf.mxu1 }
 0x5c7   :  { %v2378_v32 = vadd.f32 %v1384_v60, %v1176_v18  ;;  %1211 = vmax.xlane.f32.xlu1 %v2375_v17 }
 0x5c9   :  { %1213 = vmax.xlane.f32.xlu0 %v2378_v32 }
 0x5cb   :  { %1215 = vmax.xlane.f32.xlu1 %v2381_v21 }
 0x634   :  { %v1188_v23 = vpop.xlane.xlu0 %1187 }
 0x635   :  { %v2385_v24 = vsub.f32 %v1112_v62, %v1188_v23 }
 0x637   :  { %v1235_v25 = vmul.f32 1.442695, %v2385_v24 }
 0x638   :  { %v1192_v26 = vpop.xlane.xlu1 %1191  ;;  %v1186_v27 = vpop.xlane.xlu0 %1185 }
 0x639   :  { %1921 = vpow2.f32 %v1235_v25  ;;  %v2388_v28 = vsub.f32 %v1122_v2, %v1192_v26  ;;  %v2390_v29 = vsub.f32 %v1107_v1, %v1186_v27 }
 0x63b   :  { %v1239_v30 = vmul.f32 1.442695, %v2388_v28  ;;  %v1233_v31 = vmul.f32 1.442695, %v2390_v29 }
 0x63c   :  { %v1190_v33 = vpop.xlane.xlu1 %1189 }
 0x63d   :  { %1923 = vpow2.f32 %v1239_v30  ;;  %v2394_v34 = vsub.f32 %v1117_v5, %v1190_v33 }
 0x63e   :  { %1925 = vpow2.f32 %v1233_v31  ;;  %v1194_v35 = vpop.xlane.xlu0 %1193 }
 0x63f   :  { %v1237_v36 = vmul.f32 1.442695, %v2394_v34  ;;  %v2397_v37 = vsub.f32 %v1127_v7, %v1194_v35 }
 0x640   :  { %v1196_v38 = vpop.xlane.xlu1 %1195 }
 0x641   :  { %1927 = vpow2.f32 %v1237_v36  ;;  %v2399_v39 = vsub.f32 %v1132_v9, %v1196_v38  ;;  %v1241_v40 = vmul.f32 1.442695, %v2397_v37 }
 0x642   :  { %v1198_v16 = vpop.xlane.xlu0 %1197 }
 0x643   :  { %v1243_v19 = vmul.f32 1.442695, %v2399_v39  ;;  %v2403_v41 = vsub.f32 %v1137_v51, %v1198_v16 }
 0x644   :  { %v1200_v42 = vpop.xlane.xlu1 %1199 }
 0x645   :  { %1929 = vpow2.f32 %v1243_v19  ;;  %v2405_v43 = vsub.f32 %v1142_v53, %v1200_v42  ;;  %v1245_v20 = vmul.f32 1.442695, %v2403_v41 }
 0x646   :  { %v1922_v44 = vpop.eup %1921  ;;  %1931 = vpow2.f32 %v1241_v40  ;;  %v1202_v45 = vpop.xlane.xlu0 %1201 }
 0x647   :  { %v1247_v46 = vmul.f32 1.442695, %v2405_v43  ;;  %v2409_v47 = vsub.f32 %v1147_v55, %v1202_v45  ;;  %1267 = vadd.xlane.f32.xlu1 %v1922_v44 }
 0x648   :  { %v1204_v48 = vpop.xlane.xlu1 %1203 }
 0x649   :  { %1933 = vpow2.f32 %v1247_v46  ;;  %v2411_v22 = vsub.f32 %v1152_v57, %v1204_v48  ;;  %v1249_v50 = vmul.f32 1.442695, %v2409_v47 }
 0x64a   :  { %v1924_v49 = vpop.eup %1923  ;;  %1935 = vpow2.f32 %v1245_v20  ;;  %v1206_v60 = vpop.xlane.xlu0 %1205 }
 0x64b   :  { %v1926_v61 = vpop.eup %1925  ;;  %v1251_v62 = vmul.f32 1.442695, %v2411_v22  ;;  %v2415_v63 = vsub.f32 %v1157_v59, %v1206_v60  ;;  %1271 = vadd.xlane.f32.xlu1 %v1924_v49 }
 0x64c   :  { %1265 = vadd.xlane.f32.xlu0 %v1926_v61  ;;  %v1208_v0 = vpop.xlane.xlu1 %1207 }
 0x64d   :  { %1937 = vpow2.f32 %v1251_v62  ;;  %v2417_v1 = vsub.f32 %v1162_v12, %v1208_v0  ;;  %v1253_v3 = vmul.f32 1.442695, %v2415_v63 }
 0x64e   :  { %v1928_v2 = vpop.eup %1927  ;;  %1939 = vpow2.f32 %v1249_v50  ;;  %v1210_v4 = vpop.xlane.xlu0 %1209 }
 0x64f   :  { %v1255_v5 = vmul.f32 1.442695, %v2417_v1  ;;  %v2422_v6 = vsub.f32 %v2373_v14, %v1210_v4 }
 0x650   :  { %1269 = vadd.xlane.f32.xlu0 %v1928_v2  ;;  %v1212_v7 = vpop.xlane.xlu1 %1211 }
 0x651   :  { %1941 = vpow2.f32 %v1255_v5  ;;  %v2425_v8 = vsub.f32 %v2375_v17, %v1212_v7  ;;  %v1257_v10 = vmul.f32 1.442695, %v2422_v6 }
 0x652   :  { %v1930_v9 = vpop.eup %1929  ;;  %1943 = vpow2.f32 %v1253_v3  ;;  %v1214_v51 = vpop.xlane.xlu0 %1213 }
 0x653   :  { %v1932_v52 = vpop.eup %1931  ;;  %v1259_v53 = vmul.f32 1.442695, %v2425_v8  ;;  %v2430_v54 = vsub.f32 %v2378_v32, %v1214_v51  ;;  %1275 = vadd.xlane.f32.xlu1 %v1930_v9 }
 0x654   :  { %1273 = vadd.xlane.f32.xlu0 %v1932_v52  ;;  %v1216_v55 = vpop.xlane.xlu1 %1215 }
 0x655   :  { %1945 = vpow2.f32 %v1259_v53  ;;  %v2433_v56 = vsub.f32 %v2381_v21, %v1216_v55  ;;  %v1261_v58 = vmul.f32 1.442695, %v2430_v54 }
 0x656   :  { %v1934_v57 = vpop.eup %1933  ;;  %1947 = vpow2.f32 %v1257_v10 }
 0x657   :  { %v1936_v59 = vpop.eup %1935  ;;  %v1263_v11 = vmul.f32 1.442695, %v2433_v56  ;;  %1279 = vadd.xlane.f32.xlu1 %v1934_v57 }
 0x658   :  { %1277 = vadd.xlane.f32.xlu0 %v1936_v59 }
 0x659   :  { %1949 = vpow2.f32 %v1263_v11 }
 0x65a   :  { %v1938_v12 = vpop.eup %1937  ;;  %1951 = vpow2.f32 %v1261_v58 }
 0x65b   :  { %v1940_v13 = vpop.eup %1939  ;;  %1283 = vadd.xlane.f32.xlu1 %v1938_v12 }
 0x65c   :  { %1281 = vadd.xlane.f32.xlu0 %v1940_v13 }
 0x65e   :  { %v1942_v14 = vpop.eup %1941 }
 0x65f   :  { %v1944_v15 = vpop.eup %1943  ;;  %1287 = vadd.xlane.f32.xlu1 %v1942_v14 }
 0x660   :  { %1285 = vadd.xlane.f32.xlu0 %v1944_v15 }
 0x662   :  { %v1946_v17 = vpop.eup %1945 }
 0x663   :  { %v1948_v18 = vpop.eup %1947  ;;  %1291 = vadd.xlane.f32.xlu1 %v1946_v17 }
 0x664   :  { %1289 = vadd.xlane.f32.xlu0 %v1948_v18 }
 0x666   :  { %v1950_v32 = vpop.eup %1949 }
 0x667   :  { %v1952_v21 = vpop.eup %1951  ;;  %1295 = vadd.xlane.f32.xlu1 %v1950_v32 }
 0x668   :  { %1293 = vadd.xlane.f32.xlu0 %v1952_v21 }
 0x6d0   :  { %v1268_v23 = vpop.xlane.xlu1 %1267 }
 0x6d1   :  { %1953 = vlog2.f32 %v1268_v23 }
 0x6d4   :  { %v1272_v25 = vpop.xlane.xlu1 %1271 }
 0x6d5   :  { %1955 = vlog2.f32 %v1272_v25  ;;  %v1266_v26 = vpop.xlane.xlu0 %1265 }
 0x6d6   :  { %1957 = vlog2.f32 %v1266_v26 }
 0x6d9   :  { %v1270_v27 = vpop.xlane.xlu0 %1269 }
 0x6da   :  { %1959 = vlog2.f32 %v1270_v27 }
 0x6dc   :  { %v1276_v30 = vpop.xlane.xlu1 %1275 }
 0x6dd   :  { %1961 = vlog2.f32 %v1276_v30  ;;  %v1274_v31 = vpop.xlane.xlu0 %1273 }
 0x6de   :  { %v1954_v33 = vpop.eup %1953  ;;  %1963 = vlog2.f32 %v1274_v31 }
 0x6df   :  { %v1300_v35 = vmul.f32 0.6931472, %v1954_v33 }
 0x6e0   :  { %v1280_v36 = vpop.xlane.xlu1 %1279 }
 0x6e1   :  { %v1330_v38 = vsub.f32 %v2385_v24, %v1300_v35  ;;  %1965 = vlog2.f32 %v1280_v36  ;;  %v1278_v40 = vpop.xlane.xlu0 %1277 }
 0x6e2   :  { %v1956_v16 = vpop.eup %1955  ;;  %1967 = vlog2.f32 %v1278_v40 }
 0x6e3   :  { %v1958_v19 = vpop.eup %1957  ;;  %1346 = vst [vmem:[#allocation11 + $0x8] sm:$0xff] %v1330_v38  ;;  %v1304_v42 = vmul.f32 0.6931472, %v1956_v16 }
 0x6e4   :  { %v1298_v44 = vmul.f32 0.6931472, %v1958_v19  ;;  %v1284_v20 = vpop.xlane.xlu1 %1283 }
 0x6e5   :  { %v1332_v45 = vsub.f32 %v2388_v28, %v1304_v42  ;;  %1969 = vlog2.f32 %v1284_v20  ;;  %v1282_v46 = vpop.xlane.xlu0 %1281 }
 0x6e6   :  { %v1329_v48 = vsub.f32 %v2390_v29, %v1298_v44  ;;  %1971 = vlog2.f32 %v1282_v46 }
 0x6e7   :  { %v1960_v49 = vpop.eup %1959  ;;  %1348 = vst [vmem:[#allocation11 + $0x18] sm:$0xff] %v1332_v45 }
 0x6e8   :  { %1345 = vst [vmem:[#allocation11] sm:$0xff] %v1329_v48  ;;  %v1302_v24 = vmul.f32 0.6931472, %v1960_v49  ;;  %v1288_v50 = vpop.xlane.xlu1 %1287 }
 0x6e9   :  { %1973 = vlog2.f32 %v1288_v50  ;;  %v1286_v60 = vpop.xlane.xlu0 %1285 }
 0x6ea   :  { %v1962_v61 = vpop.eup %1961  ;;  %v1331_v62 = vsub.f32 %v2394_v34, %v1302_v24  ;;  %1975 = vlog2.f32 %v1286_v60 }
 0x6eb   :  { %v1964_v0 = vpop.eup %1963  ;;  %v1308_v2 = vmul.f32 0.6931472, %v1962_v61 }
 0x6ec   :  { %1347 = vst [vmem:[#allocation11 + $0x10] sm:$0xff] %v1331_v62  ;;  %v1306_v28 = vmul.f32 0.6931472, %v1964_v0  ;;  %v1292_v3 = vpop.xlane.xlu1 %1291 }
 0x6ed   :  { %v1334_v4 = vsub.f32 %v2399_v39, %v1308_v2  ;;  %1977 = vlog2.f32 %v1292_v3  ;;  %v1290_v29 = vpop.xlane.xlu0 %1289 }
 0x6ee   :  { %v1966_v5 = vpop.eup %1965  ;;  %v1333_v7 = vsub.f32 %v2397_v37, %v1306_v28  ;;  %1979 = vlog2.f32 %v1290_v29 }
 0x6ef   :  { %v1968_v9 = vpop.eup %1967  ;;  %1350 = vst [vmem:[#allocation11 + $0x28] sm:$0xff] %v1334_v4  ;;  %v1312_v10 = vmul.f32 0.6931472, %v1966_v5 }
 0x6f0   :  { %1349 = vst [vmem:[#allocation11 + $0x20] sm:$0xff] %v1333_v7  ;;  %v1310_v51 = vmul.f32 0.6931472, %v1968_v9  ;;  %v1296_v34 = vpop.xlane.xlu1 %1295 }
 0x6f1   :  { %v1336_v52 = vsub.f32 %v2405_v43, %v1312_v10  ;;  %1981 = vlog2.f32 %v1296_v34  ;;  %v1294_v53 = vpop.xlane.xlu0 %1293 }
 0x6f2   :  { %v1970_v55 = vpop.eup %1969  ;;  %v1335_v57 = vsub.f32 %v2403_v41, %v1310_v51  ;;  %1983 = vlog2.f32 %v1294_v53 }
 0x6f3   :  { %v1972_v39 = vpop.eup %1971  ;;  %1352 = vst [vmem:[#allocation11 + $0x38] sm:$0xff] %v1336_v52  ;;  %v1316_v58 = vmul.f32 0.6931472, %v1970_v55 }
 0x6f4   :  { %1351 = vst [vmem:[#allocation11 + $0x30] sm:$0xff] %v1335_v57  ;;  %v1314_v37 = vmul.f32 0.6931472, %v1972_v39 }
 0x6f5   :  { %v1338_v59 = vsub.f32 %v2411_v22, %v1316_v58 }
 0x6f6   :  { %v1974_v11 = vpop.eup %1973  ;;  %v1337_v12 = vsub.f32 %v2409_v47, %v1314_v37 }
 0x6f7   :  { %v1976_v13 = vpop.eup %1975  ;;  %1354 = vst [vmem:[#allocation11 + $0x48] sm:$0xff] %v1338_v59  ;;  %v1320_v14 = vmul.f32 0.6931472, %v1974_v11 }
 0x6f8   :  { %1353 = vst [vmem:[#allocation11 + $0x40] sm:$0xff] %v1337_v12  ;;  %v1318_v43 = vmul.f32 0.6931472, %v1976_v13 }
 0x6f9   :  { %v1340_v15 = vsub.f32 %v2417_v1, %v1320_v14 }
 0x6fa   :  { %v1978_v17 = vpop.eup %1977  ;;  %v1339_v41 = vsub.f32 %v2415_v63, %v1318_v43 }
 0x6fb   :  { %v1980_v18 = vpop.eup %1979  ;;  %1356 = vst [vmem:[#allocation11 + $0x58] sm:$0xff] %v1340_v15  ;;  %v1324_v32 = vmul.f32 0.6931472, %v1978_v17 }
 0x6fc   :  { %1355 = vst [vmem:[#allocation11 + $0x50] sm:$0xff] %v1339_v41  ;;  %v1322_v21 = vmul.f32 0.6931472, %v1980_v18 }
 0x6fd   :  { %v1342_v22 = vsub.f32 %v2425_v8, %v1324_v32 }
 0x6fe   :  { %v1982_v23 = vpop.eup %1981  ;;  %v1341_v47 = vsub.f32 %v2422_v6, %v1322_v21 }
 0x6ff   :  { %v1984_v25 = vpop.eup %1983  ;;  %1358 = vst [vmem:[#allocation11 + $0x68] sm:$0xff] %v1342_v22  ;;  %v1328_v26 = vmul.f32 0.6931472, %v1982_v23 }
 0x700   :  { %1357 = vst [vmem:[#allocation11 + $0x60] sm:$0xff] %v1341_v47  ;;  %v1326_v1 = vmul.f32 0.6931472, %v1984_v25 }
 0x701   :  { %v1344_v27 = vsub.f32 %v2433_v56, %v1328_v26 }
 0x702   :  { %v1343_v63 = vsub.f32 %v2430_v54, %v1326_v1 }
 0x703   :  { %1360 = vst [vmem:[#allocation11 + $0x78] sm:$0xff] %v1344_v27 }
 0x704   :  { %1359 = vst [vmem:[#allocation11 + $0x70] sm:$0xff] %v1343_v63 }
 0x705   :  { %2096 = shalt.err (!%p2093_p1)
}
 0x706   :  { %1372 = dma.vmem_to_hbm [thread:$0]  %s1367_s23, 2048, %s2469_s10, [#allocation4], %s2115_s18, %s2115_s18, %s2116_s19  }
 0x707   :  { %2111 = dma.done.wait [#allocation4], 2048  }
 0x708   :  { %2112 = vsyncadd [#allocation4], 4294965248 }
 0x709   :  { %1376 = vsyncpa [#allocation3], 1 }
 0x70a   :  { %1377 = vsyncpa [#allocation6], 1 }
 0x70b   :  { %1378 = vsyncpa [#allocation9], 1 }
 0x70c   :  { %1379 = vsyncpa [#allocation4], 1 }

</bundles_post_ra>
